<compile_context>
chip_gen: v7x
topology: tpu7x:2x2x1
jax: 0.10.0
libtpu: 0.0.40
codegen_flags: <defaults>
</compile_context>

<pallas_src>
import jax
import jax.numpy as jnp
import numpy as np
from jax import lax
from jax.experimental import pallas as pl
from jax.experimental.pallas import tpu as pltpu

# Problem sizes (consistent with Conv2d(1,3,(9,5)) / Conv2d(3,1,(9,5)))
N, H, W = 2, 16, 16
KH, KW = 9, 5
PH, PW = KH // 2, KW // 2          # 'same' padding for odd kernels, stride 1
HP, WP = H + 2 * PH, W + 2 * PW    # padded spatial extents
C_MID = 3
EPS = 1e-5                         # BatchNorm2d default eps


# ---------------- fused Pallas kernel ----------------

def residual_block_kernel(x_ref, b1_ref, w1b_ref, w2b_ref, o_ref,
                          xpad_ref, h1pad_ref):
    # x_ref:     (N, H, W)            VMEM  single-channel input / residual path
    # b1_ref:    (1, W*C_MID)         VMEM  conv1 bias pre-tiled along (w, c)
    # w1b_ref:   (KH, WP, W*C_MID)    VMEM  banded conv1 weights (dot RHS)
    # w2b_ref:   (KH, WP*C_MID, W)    VMEM  banded conv2 weights (dot RHS)
    # o_ref:     (N, H, W)            VMEM  output
    # xpad_ref:  (N, HP, WP)          VMEM  scratch: 'same'-padded input
    # h1pad_ref: (N, HP, WP*C_MID)    VMEM  scratch: padded conv1 activations,
    #                                        channel-minor layout (.., wp*C + c)

    WC = W * C_MID
    WPC = WP * C_MID
    PWC = PW * C_MID

    # ---- in-kernel 'same' padding of the input: zero halos only, write the
    #      interior exactly once (no full-scratch zero + overwrite) ----
    xpad_ref[:, 0:PH, :] = jnp.zeros((N, PH, WP), jnp.float32)
    xpad_ref[:, PH + H:HP, :] = jnp.zeros((N, PH, WP), jnp.float32)
    xpad_ref[:, PH:PH + H, 0:PW] = jnp.zeros((N, H, PW), jnp.float32)
    xpad_ref[:, PH:PH + H, PW + W:WP] = jnp.zeros((N, H, PW), jnp.float32)
    xpad_ref[:, PH:PH + H, PW:PW + W] = x_ref[...]

    # ---- conv1 + bias + ReLU: KH small MXU matmuls ----
    # Row block for tap kh: (N*H, WP).  The banded weights fold the kw taps and
    # the output channel into the matmul's N dimension -> (N*H, W*C_MID).
    h1 = jnp.zeros((N * H, WC), jnp.float32)
    for kh in range(KH):
        rows = xpad_ref[:, kh:kh + H, :].reshape(N * H, WP)
        h1 = h1 + jnp.dot(rows, w1b_ref[kh],
                          preferred_element_type=jnp.float32)
    h1 = jnp.maximum(h1 + b1_ref[...], 0.0)

    # ---- stage conv1 activations (never leave VMEM) into the padded,
    #      channel-minor conv2 input: zero halos only, interior written once ----
    h1pad_ref[:, 0:PH, :] = jnp.zeros((N, PH, WPC), jnp.float32)
    h1pad_ref[:, PH + H:HP, :] = jnp.zeros((N, PH, WPC), jnp.float32)
    h1pad_ref[:, PH:PH + H, 0:PWC] = jnp.zeros((N, H, PWC), jnp.float32)
    h1pad_ref[:, PH:PH + H, PWC + WC:WPC] = jnp.zeros((N, H, PWC), jnp.float32)
    h1pad_ref[:, PH:PH + H, PWC:PWC + WC] = h1.reshape(N, H, WC)

    # ---- conv2: KH small MXU matmuls, contraction over (wp, c) ----
    y = jnp.zeros((N * H, W), jnp.float32)
    for kh in range(KH):
        rows = h1pad_ref[:, kh:kh + H, :].reshape(N * H, WPC)
        y = y + jnp.dot(rows, w2b_ref[kh],
                        preferred_element_type=jnp.float32)
    # conv2 bias intentionally omitted: BatchNorm subtracts the batch mean
    # immediately afterwards, so adding b2 is a mathematical no-op.

    # ---- BatchNorm2d(1), training-mode batch statistics (two-pass) ----
    m = float(N * H * W)
    mean = jnp.sum(y) / m
    yc = y - mean
    var = jnp.sum(yc * yc) / m
    ynorm = yc * lax.rsqrt(var + EPS)

    # ---- residual add ----
    o_ref[...] = ynorm.reshape(N, H, W) + x_ref[...]


# ---------------- wrapper ----------------

def _banded_weights(w1, w2):
    """Fold the width taps of each conv into 'banded' matmul RHS matrices.

    conv as matmul: for each kh,
        out_rows(N*H, W*Cout) = in_rows(N*H, WP*Cin) @ B[kh](WP*Cin, W*Cout)
    with B[kh][(wp, cin), (w, cout)] = weight[cout, cin, kh, wp - w]
    when 0 <= wp - w < KW, else 0.
    """
    wp_idx = jnp.arange(WP)[:, None]              # (WP, 1)
    w_idx = jnp.arange(W)[None, :]                # (1, W)
    kw_idx = wp_idx - w_idx                       # (WP, W)
    valid = (kw_idx >= 0) & (kw_idx < KW)
    kw_c = jnp.clip(kw_idx, 0, KW - 1)

    # conv1: Cin = 1, Cout = C_MID.  B1: (KH, WP, W*C_MID)
    w1_t = jnp.transpose(w1[:, 0], (1, 2, 0))                         # (KH, KW, C)
    b1m = jnp.where(valid[None, :, :, None], w1_t[:, kw_c, :], 0.0)   # (KH, WP, W, C)
    w1_band = b1m.reshape(KH, WP, W * C_MID)

    # conv2: Cin = C_MID, Cout = 1.  B2: (KH, WP*C_MID, W)
    w2_t = jnp.transpose(w2[0], (1, 0, 2))                            # (KH, C, KW)
    b2m = jnp.where(valid[None, None, :, :], w2_t[:, :, kw_c], 0.0)   # (KH, C, WP, W)
    w2_band = jnp.transpose(b2m, (0, 2, 1, 3)).reshape(KH, WP * C_MID, W)
    return w1_band, w2_band


def residual_block(x, w1, b1, w2, b2):
    # x: (N, 1, H, W) f32; w1: (C_MID,1,KH,KW); b1: (C_MID,); w2: (1,C_MID,KH,KW); b2: (1,)
    del b2  # no-op under the following BatchNorm's mean subtraction
    xs = x[:, 0]                                       # (N, H, W)
    w1_band, w2_band = _banded_weights(w1, w2)
    b1_row = jnp.tile(b1, W).reshape(1, W * C_MID)     # bias along (w, c) layout

    out = pl.pallas_call(
        residual_block_kernel,
        out_shape=jax.ShapeDtypeStruct((N, H, W), jnp.float32),
        in_specs=[pl.BlockSpec(memory_space=pltpu.MemorySpace.VMEM)] * 4,
        out_specs=pl.BlockSpec(memory_space=pltpu.MemorySpace.VMEM),
        scratch_shapes=[
            pltpu.VMEM((N, HP, WP), jnp.float32),           # padded input
            pltpu.VMEM((N, HP, WP * C_MID), jnp.float32),   # padded conv1 acts
        ],
    )(xs, b1_row, w1_band, w2_band)

    return out[:, None, :, :]                          # back to (N, 1, H, W)


# ---------------- pure-JAX reference (for correctness check) ----------------

def reference(x, w1, b1, w2, b2):
    dn = ('NCHW', 'OIHW', 'NCHW')
    h = lax.conv_general_dilated(x, w1, (1, 1), [(PH, PH), (PW, PW)],
                                 dimension_numbers=dn)
    h = jax.nn.relu(h + b1[None, :, None, None])
    h = lax.conv_general_dilated(h, w2, (1, 1), [(PH, PH), (PW, PW)],
                                 dimension_numbers=dn)
    h = h + b2[None, :, None, None]
    mean = jnp.mean(h, axis=(0, 2, 3), keepdims=True)
    var = jnp.mean((h - mean) ** 2, axis=(0, 2, 3), keepdims=True)
    h = (h - mean) / jnp.sqrt(var + EPS)
    return h + x


if __name__ == "__main__":
    key = jax.random.PRNGKey(0)
    k1, k2, k3, k4, k5 = jax.random.split(key, 5)

    x = jax.random.normal(k1, (N, 1, H, W), jnp.float32)

    # Deterministic synthetic parameters (PyTorch-like uniform bounds).
    fan1 = 1 * KH * KW
    b1_bound = 1.0 / np.sqrt(fan1)
    w1 = jax.random.uniform(k2, (C_MID, 1, KH, KW), jnp.float32, -b1_bound, b1_bound)
    b1 = jax.random.uniform(k3, (C_MID,), jnp.float32, -b1_bound, b1_bound)

    fan2 = C_MID * KH * KW
    b2_bound = 1.0 / np.sqrt(fan2)
    w2 = jax.random.uniform(k4, (1, C_MID, KH, KW), jnp.float32, -b2_bound, b2_bound)
    b2 = jax.random.uniform(k5, (1,), jnp.float32, -b2_bound, b2_bound)

    out = residual_block(x, w1, b1, w2, b2)
    jax.block_until_ready(out)

    ref = reference(x, w1, b1, w2, b2)
    np.testing.assert_allclose(np.asarray(out), np.asarray(ref),
                               rtol=1e-4, atol=1e-4)
    print("KERNEL_OK")
</pallas_src>

<mosaic_0001>
module attributes {stable_mosaic.version = 11 : i64} {
  func.func @residual_block_kernel(%arg0: memref<2x16x16xf32, #tpu.memory_space<vmem>>, %arg1: memref<1x48xf32, #tpu.memory_space<vmem>>, %arg2: memref<9x20x48xf32, #tpu.memory_space<vmem>>, %arg3: memref<9x60x16xf32, #tpu.memory_space<vmem>>, %arg4: memref<2x16x16xf32, #tpu.memory_space<vmem>>, %arg5: memref<2x24x20xf32, #tpu.memory_space<vmem>>, %arg6: memref<2x24x60xf32, #tpu.memory_space<vmem>>) attributes {dimension_semantics = [], scalar_prefetch = 0 : i64, scratch_operands = 2 : i64, tpu.core_type = #tpu.core_type<tc>} {
    %cst = arith.constant 0.000000e+00 : f32
    %0 = vector.broadcast %cst : f32 to vector<2x4x20xf32>
    %c0 = arith.constant 0 : index
    %c0_0 = arith.constant 0 : index
    %c0_1 = arith.constant 0 : index
    %1 = vector.load %arg5[%c0, %c0_0, %c0_1] : memref<2x24x20xf32, #tpu.memory_space<vmem>>, vector<2x4x20xf32>
    tpu.vector_store %arg5[%c0, %c0_0, %c0_1], %0 {strides = array<i32>} : memref<2x24x20xf32, #tpu.memory_space<vmem>>, vector<2x4x20xf32>,
    %cst_2 = arith.constant 0.000000e+00 : f32
    %2 = vector.broadcast %cst_2 : f32 to vector<2x4x20xf32>
    %c0_3 = arith.constant 0 : index
    %c20 = arith.constant 20 : index
    %c0_4 = arith.constant 0 : index
    %3 = vector.load %arg5[%c0_3, %c20, %c0_4] : memref<2x24x20xf32, #tpu.memory_space<vmem>>, vector<2x4x20xf32>
    tpu.vector_store %arg5[%c0_3, %c20, %c0_4], %2 {strides = array<i32>} : memref<2x24x20xf32, #tpu.memory_space<vmem>>, vector<2x4x20xf32>,
    %cst_5 = arith.constant 0.000000e+00 : f32
    %4 = vector.broadcast %cst_5 : f32 to vector<2x16x2xf32>
    %c0_6 = arith.constant 0 : index
    %c4 = arith.constant 4 : index
    %c0_7 = arith.constant 0 : index
    %5 = vector.load %arg5[%c0_6, %c4, %c0_7] : memref<2x24x20xf32, #tpu.memory_space<vmem>>, vector<2x16x2xf32>
    tpu.vector_store %arg5[%c0_6, %c4, %c0_7], %4 {strides = array<i32>} : memref<2x24x20xf32, #tpu.memory_space<vmem>>, vector<2x16x2xf32>,
    %cst_8 = arith.constant 0.000000e+00 : f32
    %6 = vector.broadcast %cst_8 : f32 to vector<2x16x2xf32>
    %c0_9 = arith.constant 0 : index
    %c4_10 = arith.constant 4 : index
    %c18 = arith.constant 18 : index
    %7 = vector.load %arg5[%c0_9, %c4_10, %c18] : memref<2x24x20xf32, #tpu.memory_space<vmem>>, vector<2x16x2xf32>
    tpu.vector_store %arg5[%c0_9, %c4_10, %c18], %6 {strides = array<i32>} : memref<2x24x20xf32, #tpu.memory_space<vmem>>, vector<2x16x2xf32>,
    %c0_11 = arith.constant 0 : index
    %c0_12 = arith.constant 0 : index
    %c0_13 = arith.constant 0 : index
    %8 = vector.load %arg0[%c0_11, %c0_12, %c0_13] : memref<2x16x16xf32, #tpu.memory_space<vmem>>, vector<2x16x16xf32>
    %c0_14 = arith.constant 0 : index
    %c4_15 = arith.constant 4 : index
    %c2 = arith.constant 2 : index
    %9 = vector.load %arg5[%c0_14, %c4_15, %c2] : memref<2x24x20xf32, #tpu.memory_space<vmem>>, vector<2x16x16xf32>
    tpu.vector_store %arg5[%c0_14, %c4_15, %c2], %8 {strides = array<i32>} : memref<2x24x20xf32, #tpu.memory_space<vmem>>, vector<2x16x16xf32>,
    %cst_16 = arith.constant 0.000000e+00 : f32
    %10 = vector.broadcast %cst_16 : f32 to vector<32x48xf32>
    %c0_17 = arith.constant 0 : index
    %c0_18 = arith.constant 0 : index
    %c0_19 = arith.constant 0 : index
    %11 = vector.load %arg5[%c0_17, %c0_18, %c0_19] : memref<2x24x20xf32, #tpu.memory_space<vmem>>, vector<2x16x20xf32>
    %12 = vector.shape_cast %11 : vector<2x16x20xf32> to vector<32x20xf32>
    %c0_20 = arith.constant 0 : index
    %c0_21 = arith.constant 0 : index
    %c0_22 = arith.constant 0 : index
    %13 = vector.load %arg2[%c0_20, %c0_21, %c0_22] : memref<9x20x48xf32, #tpu.memory_space<vmem>>, vector<1x20x48xf32>
    %14 = vector.shape_cast %13 : vector<1x20x48xf32> to vector<20x48xf32>
    %cst_23 = arith.constant dense<0.000000e+00> : vector<32x48xf32>
    %15 = tpu.matmul %12, %14, %cst_23 {dimension_numbers = #tpu.dot_dimension_numbers<[1], [0], [0], [1], [0, 0, 1, 1], [], []>} : vector<32x20xf32>, vector<20x48xf32>, vector<32x48xf32> -> vector<32x48xf32>
    %16 = arith.addf %10, %15 : vector<32x48xf32>
    %c0_24 = arith.constant 0 : index
    %c1 = arith.constant 1 : index
    %c0_25 = arith.constant 0 : index
    %17 = vector.load %arg5[%c0_24, %c1, %c0_25] : memref<2x24x20xf32, #tpu.memory_space<vmem>>, vector<2x16x20xf32>
    %18 = vector.shape_cast %17 : vector<2x16x20xf32> to vector<32x20xf32>
    %c1_26 = arith.constant 1 : index
    %c0_27 = arith.constant 0 : index
    %c0_28 = arith.constant 0 : index
    %19 = vector.load %arg2[%c1_26, %c0_27, %c0_28] : memref<9x20x48xf32, #tpu.memory_space<vmem>>, vector<1x20x48xf32>
    %20 = vector.shape_cast %19 : vector<1x20x48xf32> to vector<20x48xf32>
    %cst_29 = arith.constant dense<0.000000e+00> : vector<32x48xf32>
    %21 = tpu.matmul %18, %20, %cst_29 {dimension_numbers = #tpu.dot_dimension_numbers<[1], [0], [0], [1], [0, 0, 1, 1], [], []>} : vector<32x20xf32>, vector<20x48xf32>, vector<32x48xf32> -> vector<32x48xf32>
    %22 = arith.addf %16, %21 : vector<32x48xf32>
    %c0_30 = arith.constant 0 : index
    %c2_31 = arith.constant 2 : index
    %c0_32 = arith.constant 0 : index
    %23 = vector.load %arg5[%c0_30, %c2_31, %c0_32] : memref<2x24x20xf32, #tpu.memory_space<vmem>>, vector<2x16x20xf32>
    %24 = vector.shape_cast %23 : vector<2x16x20xf32> to vector<32x20xf32>
    %c2_33 = arith.constant 2 : index
    %c0_34 = arith.constant 0 : index
    %c0_35 = arith.constant 0 : index
    %25 = vector.load %arg2[%c2_33, %c0_34, %c0_35] : memref<9x20x48xf32, #tpu.memory_space<vmem>>, vector<1x20x48xf32>
    %26 = vector.shape_cast %25 : vector<1x20x48xf32> to vector<20x48xf32>
    %cst_36 = arith.constant dense<0.000000e+00> : vector<32x48xf32>
    %27 = tpu.matmul %24, %26, %cst_36 {dimension_numbers = #tpu.dot_dimension_numbers<[1], [0], [0], [1], [0, 0, 1, 1], [], []>} : vector<32x20xf32>, vector<20x48xf32>, vector<32x48xf32> -> vector<32x48xf32>
    %28 = arith.addf %22, %27 : vector<32x48xf32>
    %c0_37 = arith.constant 0 : index
    %c3 = arith.constant 3 : index
    %c0_38 = arith.constant 0 : index
    %29 = vector.load %arg5[%c0_37, %c3, %c0_38] : memref<2x24x20xf32, #tpu.memory_space<vmem>>, vector<2x16x20xf32>
    %30 = vector.shape_cast %29 : vector<2x16x20xf32> to vector<32x20xf32>
    %c3_39 = arith.constant 3 : index
    %c0_40 = arith.constant 0 : index
    %c0_41 = arith.constant 0 : index
    %31 = vector.load %arg2[%c3_39, %c0_40, %c0_41] : memref<9x20x48xf32, #tpu.memory_space<vmem>>, vector<1x20x48xf32>
    %32 = vector.shape_cast %31 : vector<1x20x48xf32> to vector<20x48xf32>
    %cst_42 = arith.constant dense<0.000000e+00> : vector<32x48xf32>
    %33 = tpu.matmul %30, %32, %cst_42 {dimension_numbers = #tpu.dot_dimension_numbers<[1], [0], [0], [1], [0, 0, 1, 1], [], []>} : vector<32x20xf32>, vector<20x48xf32>, vector<32x48xf32> -> vector<32x48xf32>
    %34 = arith.addf %28, %33 : vector<32x48xf32>
    %c0_43 = arith.constant 0 : index
    %c4_44 = arith.constant 4 : index
    %c0_45 = arith.constant 0 : index
    %35 = vector.load %arg5[%c0_43, %c4_44, %c0_45] : memref<2x24x20xf32, #tpu.memory_space<vmem>>, vector<2x16x20xf32>
    %36 = vector.shape_cast %35 : vector<2x16x20xf32> to vector<32x20xf32>
    %c4_46 = arith.constant 4 : index
    %c0_47 = arith.constant 0 : index
    %c0_48 = arith.constant 0 : index
    %37 = vector.load %arg2[%c4_46, %c0_47, %c0_48] : memref<9x20x48xf32, #tpu.memory_space<vmem>>, vector<1x20x48xf32>
    %38 = vector.shape_cast %37 : vector<1x20x48xf32> to vector<20x48xf32>
    %cst_49 = arith.constant dense<0.000000e+00> : vector<32x48xf32>
    %39 = tpu.matmul %36, %38, %cst_49 {dimension_numbers = #tpu.dot_dimension_numbers<[1], [0], [0], [1], [0, 0, 1, 1], [], []>} : vector<32x20xf32>, vector<20x48xf32>, vector<32x48xf32> -> vector<32x48xf32>
    %40 = arith.addf %34, %39 : vector<32x48xf32>
    %c0_50 = arith.constant 0 : index
    %c5 = arith.constant 5 : index
    %c0_51 = arith.constant 0 : index
    %41 = vector.load %arg5[%c0_50, %c5, %c0_51] : memref<2x24x20xf32, #tpu.memory_space<vmem>>, vector<2x16x20xf32>
    %42 = vector.shape_cast %41 : vector<2x16x20xf32> to vector<32x20xf32>
    %c5_52 = arith.constant 5 : index
    %c0_53 = arith.constant 0 : index
    %c0_54 = arith.constant 0 : index
    %43 = vector.load %arg2[%c5_52, %c0_53, %c0_54] : memref<9x20x48xf32, #tpu.memory_space<vmem>>, vector<1x20x48xf32>
    %44 = vector.shape_cast %43 : vector<1x20x48xf32> to vector<20x48xf32>
    %cst_55 = arith.constant dense<0.000000e+00> : vector<32x48xf32>
    %45 = tpu.matmul %42, %44, %cst_55 {dimension_numbers = #tpu.dot_dimension_numbers<[1], [0], [0], [1], [0, 0, 1, 1], [], []>} : vector<32x20xf32>, vector<20x48xf32>, vector<32x48xf32> -> vector<32x48xf32>
    %46 = arith.addf %40, %45 : vector<32x48xf32>
    %c0_56 = arith.constant 0 : index
    %c6 = arith.constant 6 : index
    %c0_57 = arith.constant 0 : index
    %47 = vector.load %arg5[%c0_56, %c6, %c0_57] : memref<2x24x20xf32, #tpu.memory_space<vmem>>, vector<2x16x20xf32>
    %48 = vector.shape_cast %47 : vector<2x16x20xf32> to vector<32x20xf32>
    %c6_58 = arith.constant 6 : index
    %c0_59 = arith.constant 0 : index
    %c0_60 = arith.constant 0 : index
    %49 = vector.load %arg2[%c6_58, %c0_59, %c0_60] : memref<9x20x48xf32, #tpu.memory_space<vmem>>, vector<1x20x48xf32>
    %50 = vector.shape_cast %49 : vector<1x20x48xf32> to vector<20x48xf32>
    %cst_61 = arith.constant dense<0.000000e+00> : vector<32x48xf32>
    %51 = tpu.matmul %48, %50, %cst_61 {dimension_numbers = #tpu.dot_dimension_numbers<[1], [0], [0], [1], [0, 0, 1, 1], [], []>} : vector<32x20xf32>, vector<20x48xf32>, vector<32x48xf32> -> vector<32x48xf32>
    %52 = arith.addf %46, %51 : vector<32x48xf32>
    %c0_62 = arith.constant 0 : index
    %c7 = arith.constant 7 : index
    %c0_63 = arith.constant 0 : index
    %53 = vector.load %arg5[%c0_62, %c7, %c0_63] : memref<2x24x20xf32, #tpu.memory_space<vmem>>, vector<2x16x20xf32>
    %54 = vector.shape_cast %53 : vector<2x16x20xf32> to vector<32x20xf32>
    %c7_64 = arith.constant 7 : index
    %c0_65 = arith.constant 0 : index
    %c0_66 = arith.constant 0 : index
    %55 = vector.load %arg2[%c7_64, %c0_65, %c0_66] : memref<9x20x48xf32, #tpu.memory_space<vmem>>, vector<1x20x48xf32>
    %56 = vector.shape_cast %55 : vector<1x20x48xf32> to vector<20x48xf32>
    %cst_67 = arith.constant dense<0.000000e+00> : vector<32x48xf32>
    %57 = tpu.matmul %54, %56, %cst_67 {dimension_numbers = #tpu.dot_dimension_numbers<[1], [0], [0], [1], [0, 0, 1, 1], [], []>} : vector<32x20xf32>, vector<20x48xf32>, vector<32x48xf32> -> vector<32x48xf32>
    %58 = arith.addf %52, %57 : vector<32x48xf32>
    %c0_68 = arith.constant 0 : index
    %c8 = arith.constant 8 : index
    %c0_69 = arith.constant 0 : index
    %59 = vector.load %arg5[%c0_68, %c8, %c0_69] : memref<2x24x20xf32, #tpu.memory_space<vmem>>, vector<2x16x20xf32>
    %60 = vector.shape_cast %59 : vector<2x16x20xf32> to vector<32x20xf32>
    %c8_70 = arith.constant 8 : index
    %c0_71 = arith.constant 0 : index
    %c0_72 = arith.constant 0 : index
    %61 = vector.load %arg2[%c8_70, %c0_71, %c0_72] : memref<9x20x48xf32, #tpu.memory_space<vmem>>, vector<1x20x48xf32>
    %62 = vector.shape_cast %61 : vector<1x20x48xf32> to vector<20x48xf32>
    %cst_73 = arith.constant dense<0.000000e+00> : vector<32x48xf32>
    %63 = tpu.matmul %60, %62, %cst_73 {dimension_numbers = #tpu.dot_dimension_numbers<[1], [0], [0], [1], [0, 0, 1, 1], [], []>} : vector<32x20xf32>, vector<20x48xf32>, vector<32x48xf32> -> vector<32x48xf32>
    %64 = arith.addf %58, %63 : vector<32x48xf32>
    %c0_74 = arith.constant 0 : index
    %c0_75 = arith.constant 0 : index
    %65 = vector.load %arg1[%c0_74, %c0_75] : memref<1x48xf32, #tpu.memory_space<vmem>>, vector<1x48xf32>
    %66 = vector.broadcast %65 : vector<1x48xf32> to vector<32x48xf32>
    %67 = arith.addf %64, %66 : vector<32x48xf32>
    %cst_76 = arith.constant 0.000000e+00 : f32
    %68 = vector.broadcast %cst_76 : f32 to vector<32x48xf32>
    %69 = arith.maximumf %67, %68 : vector<32x48xf32>
    %cst_77 = arith.constant 0.000000e+00 : f32
    %70 = vector.broadcast %cst_77 : f32 to vector<2x4x60xf32>
    %c0_78 = arith.constant 0 : index
    %c0_79 = arith.constant 0 : index
    %c0_80 = arith.constant 0 : index
    %71 = vector.load %arg6[%c0_78, %c0_79, %c0_80] : memref<2x24x60xf32, #tpu.memory_space<vmem>>, vector<2x4x60xf32>
    tpu.vector_store %arg6[%c0_78, %c0_79, %c0_80], %70 {strides = array<i32>} : memref<2x24x60xf32, #tpu.memory_space<vmem>>, vector<2x4x60xf32>,
    %cst_81 = arith.constant 0.000000e+00 : f32
    %72 = vector.broadcast %cst_81 : f32 to vector<2x4x60xf32>
    %c0_82 = arith.constant 0 : index
    %c20_83 = arith.constant 20 : index
    %c0_84 = arith.constant 0 : index
    %73 = vector.load %arg6[%c0_82, %c20_83, %c0_84] : memref<2x24x60xf32, #tpu.memory_space<vmem>>, vector<2x4x60xf32>
    tpu.vector_store %arg6[%c0_82, %c20_83, %c0_84], %72 {strides = array<i32>} : memref<2x24x60xf32, #tpu.memory_space<vmem>>, vector<2x4x60xf32>,
    %cst_85 = arith.constant 0.000000e+00 : f32
    %74 = vector.broadcast %cst_85 : f32 to vector<2x16x6xf32>
    %c0_86 = arith.constant 0 : index
    %c4_87 = arith.constant 4 : index
    %c0_88 = arith.constant 0 : index
    %75 = vector.load %arg6[%c0_86, %c4_87, %c0_88] : memref<2x24x60xf32, #tpu.memory_space<vmem>>, vector<2x16x6xf32>
    tpu.vector_store %arg6[%c0_86, %c4_87, %c0_88], %74 {strides = array<i32>} : memref<2x24x60xf32, #tpu.memory_space<vmem>>, vector<2x16x6xf32>,
    %cst_89 = arith.constant 0.000000e+00 : f32
    %76 = vector.broadcast %cst_89 : f32 to vector<2x16x6xf32>
    %c0_90 = arith.constant 0 : index
    %c4_91 = arith.constant 4 : index
    %c54 = arith.constant 54 : index
    %77 = vector.load %arg6[%c0_90, %c4_91, %c54] : memref<2x24x60xf32, #tpu.memory_space<vmem>>, vector<2x16x6xf32>
    tpu.vector_store %arg6[%c0_90, %c4_91, %c54], %76 {strides = array<i32>} : memref<2x24x60xf32, #tpu.memory_space<vmem>>, vector<2x16x6xf32>,
    %78 = vector.shape_cast %69 : vector<32x48xf32> to vector<2x16x48xf32>
    %c0_92 = arith.constant 0 : index
    %c4_93 = arith.constant 4 : index
    %c6_94 = arith.constant 6 : index
    %79 = vector.load %arg6[%c0_92, %c4_93, %c6_94] : memref<2x24x60xf32, #tpu.memory_space<vmem>>, vector<2x16x48xf32>
    tpu.vector_store %arg6[%c0_92, %c4_93, %c6_94], %78 {strides = array<i32>} : memref<2x24x60xf32, #tpu.memory_space<vmem>>, vector<2x16x48xf32>,
    %cst_95 = arith.constant 0.000000e+00 : f32
    %80 = vector.broadcast %cst_95 : f32 to vector<32x16xf32>
    %c0_96 = arith.constant 0 : index
    %c0_97 = arith.constant 0 : index
    %c0_98 = arith.constant 0 : index
    %81 = vector.load %arg6[%c0_96, %c0_97, %c0_98] : memref<2x24x60xf32, #tpu.memory_space<vmem>>, vector<2x16x60xf32>
    %82 = vector.shape_cast %81 : vector<2x16x60xf32> to vector<32x60xf32>
    %c0_99 = arith.constant 0 : index
    %c0_100 = arith.constant 0 : index
    %c0_101 = arith.constant 0 : index
    %83 = vector.load %arg3[%c0_99, %c0_100, %c0_101] : memref<9x60x16xf32, #tpu.memory_space<vmem>>, vector<1x60x16xf32>
    %84 = vector.shape_cast %83 : vector<1x60x16xf32> to vector<60x16xf32>
    %cst_102 = arith.constant dense<0.000000e+00> : vector<32x16xf32>
    %85 = tpu.matmul %82, %84, %cst_102 {dimension_numbers = #tpu.dot_dimension_numbers<[1], [0], [0], [1], [0, 0, 1, 1], [], []>} : vector<32x60xf32>, vector<60x16xf32>, vector<32x16xf32> -> vector<32x16xf32>
    %86 = arith.addf %80, %85 : vector<32x16xf32>
    %c0_103 = arith.constant 0 : index
    %c1_104 = arith.constant 1 : index
    %c0_105 = arith.constant 0 : index
    %87 = vector.load %arg6[%c0_103, %c1_104, %c0_105] : memref<2x24x60xf32, #tpu.memory_space<vmem>>, vector<2x16x60xf32>
    %88 = vector.shape_cast %87 : vector<2x16x60xf32> to vector<32x60xf32>
    %c1_106 = arith.constant 1 : index
    %c0_107 = arith.constant 0 : index
    %c0_108 = arith.constant 0 : index
    %89 = vector.load %arg3[%c1_106, %c0_107, %c0_108] : memref<9x60x16xf32, #tpu.memory_space<vmem>>, vector<1x60x16xf32>
    %90 = vector.shape_cast %89 : vector<1x60x16xf32> to vector<60x16xf32>
    %cst_109 = arith.constant dense<0.000000e+00> : vector<32x16xf32>
    %91 = tpu.matmul %88, %90, %cst_109 {dimension_numbers = #tpu.dot_dimension_numbers<[1], [0], [0], [1], [0, 0, 1, 1], [], []>} : vector<32x60xf32>, vector<60x16xf32>, vector<32x16xf32> -> vector<32x16xf32>
    %92 = arith.addf %86, %91 : vector<32x16xf32>
    %c0_110 = arith.constant 0 : index
    %c2_111 = arith.constant 2 : index
    %c0_112 = arith.constant 0 : index
    %93 = vector.load %arg6[%c0_110, %c2_111, %c0_112] : memref<2x24x60xf32, #tpu.memory_space<vmem>>, vector<2x16x60xf32>
    %94 = vector.shape_cast %93 : vector<2x16x60xf32> to vector<32x60xf32>
    %c2_113 = arith.constant 2 : index
    %c0_114 = arith.constant 0 : index
    %c0_115 = arith.constant 0 : index
    %95 = vector.load %arg3[%c2_113, %c0_114, %c0_115] : memref<9x60x16xf32, #tpu.memory_space<vmem>>, vector<1x60x16xf32>
    %96 = vector.shape_cast %95 : vector<1x60x16xf32> to vector<60x16xf32>
    %cst_116 = arith.constant dense<0.000000e+00> : vector<32x16xf32>
    %97 = tpu.matmul %94, %96, %cst_116 {dimension_numbers = #tpu.dot_dimension_numbers<[1], [0], [0], [1], [0, 0, 1, 1], [], []>} : vector<32x60xf32>, vector<60x16xf32>, vector<32x16xf32> -> vector<32x16xf32>
    %98 = arith.addf %92, %97 : vector<32x16xf32>
    %c0_117 = arith.constant 0 : index
    %c3_118 = arith.constant 3 : index
    %c0_119 = arith.constant 0 : index
    %99 = vector.load %arg6[%c0_117, %c3_118, %c0_119] : memref<2x24x60xf32, #tpu.memory_space<vmem>>, vector<2x16x60xf32>
    %100 = vector.shape_cast %99 : vector<2x16x60xf32> to vector<32x60xf32>
    %c3_120 = arith.constant 3 : index
    %c0_121 = arith.constant 0 : index
    %c0_122 = arith.constant 0 : index
    %101 = vector.load %arg3[%c3_120, %c0_121, %c0_122] : memref<9x60x16xf32, #tpu.memory_space<vmem>>, vector<1x60x16xf32>
    %102 = vector.shape_cast %101 : vector<1x60x16xf32> to vector<60x16xf32>
    %cst_123 = arith.constant dense<0.000000e+00> : vector<32x16xf32>
    %103 = tpu.matmul %100, %102, %cst_123 {dimension_numbers = #tpu.dot_dimension_numbers<[1], [0], [0], [1], [0, 0, 1, 1], [], []>} : vector<32x60xf32>, vector<60x16xf32>, vector<32x16xf32> -> vector<32x16xf32>
    %104 = arith.addf %98, %103 : vector<32x16xf32>
    %c0_124 = arith.constant 0 : index
    %c4_125 = arith.constant 4 : index
    %c0_126 = arith.constant 0 : index
    %105 = vector.load %arg6[%c0_124, %c4_125, %c0_126] : memref<2x24x60xf32, #tpu.memory_space<vmem>>, vector<2x16x60xf32>
    %106 = vector.shape_cast %105 : vector<2x16x60xf32> to vector<32x60xf32>
    %c4_127 = arith.constant 4 : index
    %c0_128 = arith.constant 0 : index
    %c0_129 = arith.constant 0 : index
    %107 = vector.load %arg3[%c4_127, %c0_128, %c0_129] : memref<9x60x16xf32, #tpu.memory_space<vmem>>, vector<1x60x16xf32>
    %108 = vector.shape_cast %107 : vector<1x60x16xf32> to vector<60x16xf32>
    %cst_130 = arith.constant dense<0.000000e+00> : vector<32x16xf32>
    %109 = tpu.matmul %106, %108, %cst_130 {dimension_numbers = #tpu.dot_dimension_numbers<[1], [0], [0], [1], [0, 0, 1, 1], [], []>} : vector<32x60xf32>, vector<60x16xf32>, vector<32x16xf32> -> vector<32x16xf32>
    %110 = arith.addf %104, %109 : vector<32x16xf32>
    %c0_131 = arith.constant 0 : index
    %c5_132 = arith.constant 5 : index
    %c0_133 = arith.constant 0 : index
    %111 = vector.load %arg6[%c0_131, %c5_132, %c0_133] : memref<2x24x60xf32, #tpu.memory_space<vmem>>, vector<2x16x60xf32>
    %112 = vector.shape_cast %111 : vector<2x16x60xf32> to vector<32x60xf32>
    %c5_134 = arith.constant 5 : index
    %c0_135 = arith.constant 0 : index
    %c0_136 = arith.constant 0 : index
    %113 = vector.load %arg3[%c5_134, %c0_135, %c0_136] : memref<9x60x16xf32, #tpu.memory_space<vmem>>, vector<1x60x16xf32>
    %114 = vector.shape_cast %113 : vector<1x60x16xf32> to vector<60x16xf32>
    %cst_137 = arith.constant dense<0.000000e+00> : vector<32x16xf32>
    %115 = tpu.matmul %112, %114, %cst_137 {dimension_numbers = #tpu.dot_dimension_numbers<[1], [0], [0], [1], [0, 0, 1, 1], [], []>} : vector<32x60xf32>, vector<60x16xf32>, vector<32x16xf32> -> vector<32x16xf32>
    %116 = arith.addf %110, %115 : vector<32x16xf32>
    %c0_138 = arith.constant 0 : index
    %c6_139 = arith.constant 6 : index
    %c0_140 = arith.constant 0 : index
    %117 = vector.load %arg6[%c0_138, %c6_139, %c0_140] : memref<2x24x60xf32, #tpu.memory_space<vmem>>, vector<2x16x60xf32>
    %118 = vector.shape_cast %117 : vector<2x16x60xf32> to vector<32x60xf32>
    %c6_141 = arith.constant 6 : index
    %c0_142 = arith.constant 0 : index
    %c0_143 = arith.constant 0 : index
    %119 = vector.load %arg3[%c6_141, %c0_142, %c0_143] : memref<9x60x16xf32, #tpu.memory_space<vmem>>, vector<1x60x16xf32>
    %120 = vector.shape_cast %119 : vector<1x60x16xf32> to vector<60x16xf32>
    %cst_144 = arith.constant dense<0.000000e+00> : vector<32x16xf32>
    %121 = tpu.matmul %118, %120, %cst_144 {dimension_numbers = #tpu.dot_dimension_numbers<[1], [0], [0], [1], [0, 0, 1, 1], [], []>} : vector<32x60xf32>, vector<60x16xf32>, vector<32x16xf32> -> vector<32x16xf32>
    %122 = arith.addf %116, %121 : vector<32x16xf32>
    %c0_145 = arith.constant 0 : index
    %c7_146 = arith.constant 7 : index
    %c0_147 = arith.constant 0 : index
    %123 = vector.load %arg6[%c0_145, %c7_146, %c0_147] : memref<2x24x60xf32, #tpu.memory_space<vmem>>, vector<2x16x60xf32>
    %124 = vector.shape_cast %123 : vector<2x16x60xf32> to vector<32x60xf32>
    %c7_148 = arith.constant 7 : index
    %c0_149 = arith.constant 0 : index
    %c0_150 = arith.constant 0 : index
    %125 = vector.load %arg3[%c7_148, %c0_149, %c0_150] : memref<9x60x16xf32, #tpu.memory_space<vmem>>, vector<1x60x16xf32>
    %126 = vector.shape_cast %125 : vector<1x60x16xf32> to vector<60x16xf32>
    %cst_151 = arith.constant dense<0.000000e+00> : vector<32x16xf32>
    %127 = tpu.matmul %124, %126, %cst_151 {dimension_numbers = #tpu.dot_dimension_numbers<[1], [0], [0], [1], [0, 0, 1, 1], [], []>} : vector<32x60xf32>, vector<60x16xf32>, vector<32x16xf32> -> vector<32x16xf32>
    %128 = arith.addf %122, %127 : vector<32x16xf32>
    %c0_152 = arith.constant 0 : index
    %c8_153 = arith.constant 8 : index
    %c0_154 = arith.constant 0 : index
    %129 = vector.load %arg6[%c0_152, %c8_153, %c0_154] : memref<2x24x60xf32, #tpu.memory_space<vmem>>, vector<2x16x60xf32>
    %130 = vector.shape_cast %129 : vector<2x16x60xf32> to vector<32x60xf32>
    %c8_155 = arith.constant 8 : index
    %c0_156 = arith.constant 0 : index
    %c0_157 = arith.constant 0 : index
    %131 = vector.load %arg3[%c8_155, %c0_156, %c0_157] : memref<9x60x16xf32, #tpu.memory_space<vmem>>, vector<1x60x16xf32>
    %132 = vector.shape_cast %131 : vector<1x60x16xf32> to vector<60x16xf32>
    %cst_158 = arith.constant dense<0.000000e+00> : vector<32x16xf32>
    %133 = tpu.matmul %130, %132, %cst_158 {dimension_numbers = #tpu.dot_dimension_numbers<[1], [0], [0], [1], [0, 0, 1, 1], [], []>} : vector<32x60xf32>, vector<60x16xf32>, vector<32x16xf32> -> vector<32x16xf32>
    %134 = arith.addf %128, %133 : vector<32x16xf32>
    %135 = vector.shape_cast %134 : vector<32x16xf32> to vector<1x32x16xf32>
    %cst_159 = arith.constant dense<0.000000e+00> : vector<1xf32>
    %136 = vector.multi_reduction <add>, %135, %cst_159 [1, 2] : vector<1x32x16xf32> to vector<1xf32>
    %137 = vector.shape_cast %136 : vector<1xf32> to vector<1x1x1xf32>
    %138 = vector.extract %137[0, 0, 0] : f32 from vector<1x1x1xf32>
    %cst_160 = arith.constant 5.120000e+02 : f32
    %139 = arith.divf %138, %cst_160 : f32
    %140 = vector.broadcast %139 : f32 to vector<32x16xf32>
    %141 = arith.subf %134, %140 : vector<32x16xf32>
    %142 = arith.mulf %141, %141 : vector<32x16xf32>
    %143 = vector.shape_cast %142 : vector<32x16xf32> to vector<1x32x16xf32>
    %cst_161 = arith.constant dense<0.000000e+00> : vector<1xf32>
    %144 = vector.multi_reduction <add>, %143, %cst_161 [1, 2] : vector<1x32x16xf32> to vector<1xf32>
    %145 = vector.shape_cast %144 : vector<1xf32> to vector<1x1x1xf32>
    %146 = vector.extract %145[0, 0, 0] : f32 from vector<1x1x1xf32>
    %cst_162 = arith.constant 5.120000e+02 : f32
    %147 = arith.divf %146, %cst_162 : f32
    %cst_163 = arith.constant 9.99999974E-6 : f32
    %148 = arith.addf %147, %cst_163 : f32
    %149 = math.rsqrt %148 : f32
    %150 = vector.broadcast %149 : f32 to vector<32x16xf32>
    %151 = arith.mulf %141, %150 : vector<32x16xf32>
    %152 = vector.shape_cast %151 : vector<32x16xf32> to vector<2x16x16xf32>
    %c0_164 = arith.constant 0 : index
    %c0_165 = arith.constant 0 : index
    %c0_166 = arith.constant 0 : index
    %153 = vector.load %arg0[%c0_164, %c0_165, %c0_166] : memref<2x16x16xf32, #tpu.memory_space<vmem>>, vector<2x16x16xf32>
    %154 = arith.addf %152, %153 : vector<2x16x16xf32>
    %c0_167 = arith.constant 0 : index
    %c0_168 = arith.constant 0 : index
    %c0_169 = arith.constant 0 : index
    %155 = vector.load %arg4[%c0_167, %c0_168, %c0_169] : memref<2x16x16xf32, #tpu.memory_space<vmem>>, vector<2x16x16xf32>
    tpu.vector_store %arg4[%c0_167, %c0_168, %c0_169], %154 {strides = array<i32>} : memref<2x16x16xf32, #tpu.memory_space<vmem>>, vector<2x16x16xf32>,
    return
  }
}

</mosaic_0001>

<bundles_post_ra>
// kernel: tpu_custom_call.1
= control target key start
LH: loop header
LB: loop body
LE: loop exit
PB: predicated region body
PF: predicated region fallthrough
CT: control target
= control target key end

     0   :  { %s3197_s19 = smov 2   ;;  %vm23_vm0 = vcmask 15360   ;;  %vm28_vm1 = vcmask 162960   ;;  %vm18_vm2 = vcmask 158720   ;;  %v3198_v5 = vmov 0.0   ;;  %s3756_s0 = inlined_call_operand.vmem [shape: f32[2,16,16], index: 0, kind: input, shape index: {}]   ;;  %s3757_s1 = inlined_call_operand.vmem [shape: f32[1,48], index: 1, kind: input, shape index: {}]   ;;  %s3758_s2 = inlined_call_operand.vmem [shape: f32[9,20,48], index: 2, kind: input, shape index: {}]   ;;  %s3759_s3 = inlined_call_operand.vmem [shape: f32[9,60,16], index: 3, kind: input, shape index: {}]   ;;  %s3760_s4 = inlined_call_operand.hbm [shape: f32[2,16,16], index: 4, kind: output, shape index: {}]  }
   0x1   :  { %v35_v0 = vld [vmem:[%s3756_s0 + $0x10] sm:$0xff]  ;;  %v33_v1 = vld [vmem:[%s3756_s0] sm:$0xff]  ;;  %v2240_v2 = vld [vmem:[%s3758_s2 + $0x18] sm:$0xff]  ;;  %26 = vst.msk [vmem:[#allocation2 + $0x1c] sm:$0xff] %vm23_vm0, %v3198_v5 }
   0x2   :  { %45 = vrot.lane.b32.xlu1 %v35_v0, %s3197_s19  ;;  %41 = vrot.lane.b32.xlu0 %v33_v1, %s3197_s19  ;;  %v36_v3 = vld [vmem:[%s3756_s0 + $0x18] sm:$0xff]  ;;  %v34_v4 = vld [vmem:[%s3756_s0 + $0x8] sm:$0xff]  ;;  %24 = vst.msk [vmem:[#allocation2 + $0x4] sm:$0xff] %vm23_vm0, %v3198_v5  ;;  %25 = vst.msk [vmem:[#allocation2 + $0xc] sm:$0xff] %vm23_vm0, %v3198_v5 }
   0x3   :  { %27 = vst.msk [vmem:[#allocation2 + $0x24] sm:$0xff] %vm23_vm0, %v3198_v5  ;;  %v2241_v6 = vld [vmem:[%s3758_s2 + $0x20] sm:$0xff] }
   0x4   :  { %19 = vst.msk [vmem:[#allocation2] sm:$0xf] %vm18_vm2, %v3198_v5  ;;  %20 = vst.msk [vmem:[#allocation2 + $0x18] sm:$0xf] %vm18_vm2, %v3198_v5  ;;  %v2896_v7 = vpack.c.bf16 %v2241_v6, %v2240_v2 }
   0x5   :  { %21 = vst.msk [vmem:[#allocation2 + $0x14] sm:$0xf] %vm18_vm2, %v3198_v5  ;;  %22 = vst.msk [vmem:[#allocation2 + $0x2c] sm:$0xf] %vm18_vm2, %v3198_v5 }
   0x6   :  { %31 = vst.msk [vmem:[#allocation2 + $0x1c] sm:$0xff] %vm28_vm1, %v3198_v5  ;;  %29 = vst.msk [vmem:[#allocation2 + $0x4] sm:$0xff] %vm28_vm1, %v3198_v5 }
   0x7   :  { %30 = vst.msk [vmem:[#allocation2 + $0xc] sm:$0xff] %vm28_vm1, %v3198_v5  ;;  %32 = vst.msk [vmem:[#allocation2 + $0x24] sm:$0xff] %vm28_vm1, %v3198_v5 }
   0x8   :  { %9 = vsyncpa [#allocation5], 0  ;;  %v2242_v8 = vld [vmem:[%s3758_s2 + $0x28] sm:$0xf]  ;;  %47 = vrot.lane.b32.xlu1 %v36_v3, %s3197_s19  ;;  %43 = vrot.lane.b32.xlu0 %v34_v4, %s3197_s19  ;;  %vm86_vm3 = vcmask 1043456   ;;  %v62_v9 = vld [vmem:[%s3758_s2] sm:$0xff] }
   0x9   :  { %v63_v10 = vld [vmem:[%s3758_s2 + $0x8] sm:$0xff]  ;;  %2897 = vmatprep.subr.bf16.mxu0 %v2896_v7  ;;  %vm53_vm4 = vcmask 146448   ;;  %vm73_vm5 = vcmask 162816   ;;  %v64_v18 = vld [vmem:[%s3758_s2 + $0x10] sm:$0xf]  ;;  %v2254_v21 = vld [vmem:[%s3758_s2 + $0x38] sm:$0xff] }
   0xa   :  { %2899 = vmatpush3.bf16.msra.mxu0 %v2896_v7  ;;  %v2900_v11 = vpack.c.bf16 %v63_v10, %v62_v9  ;;  %v2253_v20 = vld [vmem:[%s3758_s2 + $0x30] sm:$0xff]  ;;  %v2255_v25 = vld [vmem:[%s3758_s2 + $0x40] sm:$0xf]  ;;  %v2261_v27 = vld [vmem:[%s3758_s2 + $0x48] sm:$0xff]  ;;  %vm1079_vm6 = vcmask 48128   ;;  %vm1084_vm7 = vcmask 490928  }
   0xb   :  { %2594 = vmatprep.subr.msk.mxu0 %vm86_vm3, %v2242_v8  ;;  %v2904_v22 = vpack.c.bf16 %v2254_v21, %v2253_v20  ;;  %v2262_v28 = vld [vmem:[%s3758_s2 + $0x50] sm:$0xff]  ;;  %v2263_v33 = vld [vmem:[%s3758_s2 + $0x58] sm:$0xf]  ;;  %v2269_v35 = vld [vmem:[%s3758_s2 + $0x60] sm:$0xff]  ;;  %1081 = vst.msk [vmem:[#allocation3 + $0xc] sm:$0xff] %vm1079_vm6, %v3198_v5  ;;  %vm1074_vm8 = vcmask 486400  }
   0xc   :  { %v2908_v30 = vpack.c.bf16 %v2262_v28, %v2261_v27  ;;  %v2270_v36 = vld [vmem:[%s3758_s2 + $0x68] sm:$0xff]  ;;  %v2271_v41 = vld [vmem:[%s3758_s2 + $0x70] sm:$0xf]  ;;  %v2277_v43 = vld [vmem:[%s3758_s2 + $0x78] sm:$0xff]  ;;  %1080 = vst.msk [vmem:[#allocation3 + $0x4] sm:$0xff] %vm1079_vm6, %v3198_v5  ;;  %vm3199_vm9 = vmmov 1  }
   0xd   :  { %v2912_v38 = vpack.c.bf16 %v2270_v36, %v2269_v35  ;;  %v2278_v44 = vld [vmem:[%s3758_s2 + $0x80] sm:$0xff]  ;;  %v2279_v49 = vld [vmem:[%s3758_s2 + $0x88] sm:$0xf]  ;;  %v2285_v51 = vld [vmem:[%s3758_s2 + $0x90] sm:$0xff]  ;;  %1082 = vst.msk [vmem:[#allocation3 + $0x1c] sm:$0xff] %vm1079_vm6, %v3198_v5  ;;  %s3200_s13 = smov 6  }
   0xe   :  { %2595 = vmatpush3.msk.msra.mxu0 %vm86_vm3, %v2242_v8  ;;  %v2916_v46 = vpack.c.bf16 %v2278_v44, %v2277_v43  ;;  %v2286_v52 = vld [vmem:[%s3758_s2 + $0x98] sm:$0xff]  ;;  %v2287_v57 = vld [vmem:[%s3758_s2 + $0xa0] sm:$0xf]  ;;  %v2293_v59 = vld [vmem:[%s3758_s2 + $0xa8] sm:$0xff]  ;;  %1083 = vst.msk [vmem:[#allocation3 + $0x24] sm:$0xff] %vm1079_vm6, %v3198_v5  ;;  %vm1105_vm11 = vcmask 441392  }
   0xf   :  { %2901 = vmatprep.subr.bf16.mxu0 %v2900_v11  ;;  %v2920_v54 = vpack.c.bf16 %v2286_v52, %v2285_v51  ;;  %v2294_v60 = vld [vmem:[%s3758_s2 + $0xb0] sm:$0xff]  ;;  %v2295_v1 = vld [vmem:[%s3758_s2 + $0xb8] sm:$0xf]  ;;  %v2301_v3 = vld [vmem:[%s3758_s2 + $0xc0] sm:$0xff]  ;;  %1086 = vst.msk [vmem:[#allocation3 + $0xc] sm:$0xff] %vm1084_vm7, %v3198_v5  ;;  %vm1135_vm12 = vcmask 490496  }
  0x10   :  { %v2924_v62 = vpack.c.bf16 %v2294_v60, %v2293_v59  ;;  %v2302_v4 = vld [vmem:[%s3758_s2 + $0xc8] sm:$0xff]  ;;  %v2312_v21 = vld [vmem:[%s3759_s3 + $0x50] sm:$0xff]  ;;  %1085 = vst.msk [vmem:[#allocation3 + $0x4] sm:$0xff] %vm1084_vm7, %v3198_v5  ;;  %1087 = vst.msk [vmem:[#allocation3 + $0x1c] sm:$0xff] %vm1084_vm7, %v3198_v5  ;;  %vm2155_vm13 = vcmask 130048   ;;  %s3201_s19 = smov [#allocation4]  }
  0x11   :  { %v2928_v7 = vpack.c.bf16 %v2302_v4, %v2301_v3  ;;  %v2329_v20 = vld [vmem:[%s3759_s3 + $0x88] sm:$0xff]  ;;  %1088 = vst.msk [vmem:[#allocation3 + $0x24] sm:$0xff] %vm1084_vm7, %v3198_v5  ;;  %v2314_v28 = vld [vmem:[%s3759_s3 + $0x60] sm:$0xff]  ;;  %v2317_v35 = vld [vmem:[%s3759_s3 + $0x78] sm:$0xf]  ;;  %s2229_s20 = sshll.u32 %s3201_s19, 4  ;;  %s2230_s20 = int_to_ptr.vmem [resolvable:$true] %s2229_s20 }
  0x12   :  { %v2334_v36 = vld [vmem:[%s3759_s3 + $0xb0] sm:$0xff]  ;;  %vm3461_vm10 = vmpackc.low %vm86_vm3, %vm3199_vm9  ;;  %1075 = vst.msk [vmem:[#allocation3] sm:$0xf] %vm1074_vm8, %v3198_v5  ;;  %p3178_p1 = scmp.lt.s32.totalorder %s2230_s20, %s2230_s20 }
  0x13   :  { %1076 = vst.msk [vmem:[#allocation3 + $0x18] sm:$0xf] %vm1074_vm8, %v3198_v5  ;;  %1077 = vst.msk [vmem:[#allocation3 + $0x14] sm:$0xf] %vm1074_vm8, %v3198_v5 }
  0x14   :  { %1078 = vst.msk [vmem:[#allocation3 + $0x2c] sm:$0xf] %vm1074_vm8, %v3198_v5  ;;  %v1115_v5 = vld [vmem:[%s3759_s3 + $0x8] sm:$0xff] }
  0x74   :  { %v46_v12 = vpop.permute.xlu1 %45  ;;  %v42_v13 = vpop.permute.xlu0 %41 }
  0x75   :  { %56 = vst.msk [vmem:[#allocation2 + $0x1c] sm:$0xff] %vm53_vm4, %v46_v12  ;;  %54 = vst.msk [vmem:[#allocation2 + $0x4] sm:$0xff] %vm53_vm4, %v42_v13 }
  0x7a   :  { %v48_v14 = vpop.permute.xlu1 %47  ;;  %v44_v15 = vpop.permute.xlu0 %43 }
  0x7b   :  { %57 = vst.msk [vmem:[#allocation2 + $0x24] sm:$0xff] %vm53_vm4, %v48_v14  ;;  %55 = vst.msk [vmem:[#allocation2 + $0xc] sm:$0xff] %vm53_vm4, %v44_v15 }
  0x7c   :  { %v65_v16 = vld [vmem:[#allocation2 + $0x1] sm:$0xff]  ;;  %v67_v17 = vld [vmem:[#allocation2 + $0x19] sm:$0xff] }
  0x7d   :  { %2596 = vmatprep.mubr.msk.f32.mxu0 %vm73_vm5, %v65_v16  ;;  %v58_v24 = vld [vmem:[#allocation2] sm:$0xff]  ;;  %v60_v29 = vld [vmem:[#allocation2 + $0x18] sm:$0xff] }
  0x7e   :  { %v275_v32 = vld [vmem:[#allocation2 + $0x2] sm:$0xff]  ;;  %v277_v37 = vld [vmem:[#allocation2 + $0x1a] sm:$0xff] }
  0x7f   :  { %v387_v40 = vld [vmem:[#allocation2 + $0x3] sm:$0xff]  ;;  %v389_v45 = vld [vmem:[#allocation2 + $0x1b] sm:$0xff] }
  0x80   :  { %v499_v48 = vld [vmem:[#allocation2 + $0x4] sm:$0xff]  ;;  %v501_v53 = vld [vmem:[#allocation2 + $0x1c] sm:$0xff] }
  0x81   :  { %v2310_v16 = vld [vmem:[%s3759_s3 + $0x40] sm:$0xff] }
  0x82   :  { %v66_v19 = vld [vmem:[#allocation2 + $0x9] sm:$0xff]  ;;  %v68_v23 = vld [vmem:[#allocation2 + $0x21] sm:$0xff] }
  0x83   :  { %2597 = vmatmul.mubr.msk.f32.vlgmr.msra.gmra.mrb[0].mxu0 %vm73_vm5, %v66_v19  ;;  %v3293_v26 = vld [vmem:[#allocation2 + $0x8] sm:$0xff]  ;;  %v3305_v31 = vld [vmem:[#allocation2 + $0x20] sm:$0xff]  ;;  %v948_v14 = vld [vmem:[#allocation2 + $0x10] sm:$0xff] }
  0x84   :  { %2903 = vmatpush3.bf16.msra.mxu0 %v2900_v11  ;;  %2599 = vmatprep.mubr.msk.f32.mxu0 %vm73_vm5, %v67_v17  ;;  %v276_v34 = vld [vmem:[#allocation2 + $0xa] sm:$0xff]  ;;  %v278_v39 = vld [vmem:[#allocation2 + $0x22] sm:$0xff] }
  0x85   :  { %2606 = vmatprep.subr.msk.mxu0 %vm86_vm3, %v64_v18  ;;  %v388_v42 = vld [vmem:[#allocation2 + $0xb] sm:$0xff]  ;;  %v390_v47 = vld [vmem:[#allocation2 + $0x23] sm:$0xff] }
  0x86   :  { %v500_v50 = vld [vmem:[#allocation2 + $0xc] sm:$0xff]  ;;  %v502_v55 = vld [vmem:[#allocation2 + $0x24] sm:$0xff] }
  0x87   :  { %2600 = vmatmul.mubr.msk.f32.gmra.mrb[2].mxu0 %vm73_vm5, %v68_v23  ;;  %v611_v56 = vld [vmem:[#allocation2 + $0x5] sm:$0xff]  ;;  %v612_v58 = vld [vmem:[#allocation2 + $0xd] sm:$0xff]  ;;  %v613_v61 = vld [vmem:[#allocation2 + $0x1d] sm:$0xff] }
  0x88   :  { %2607 = vmatpush3.msk.msra.mxu0 %vm86_vm3, %v64_v18  ;;  %2608 = vmatprep.mubr.msk.f32.mxu0 %vm73_vm5, %v58_v24  ;;  %v614_v63 = vld [vmem:[#allocation2 + $0x25] sm:$0xff]  ;;  %v724_v2 = vld [vmem:[#allocation2 + $0xe] sm:$0xff] }
  0x89   :  { %2905 = vmatprep.subr.bf16.mxu0 %v2904_v22  ;;  %v723_v0 = vld [vmem:[#allocation2 + $0x6] sm:$0xff]  ;;  %v725_v6 = vld [vmem:[#allocation2 + $0x1e] sm:$0xff]  ;;  %v836_v10 = vld [vmem:[#allocation2 + $0xf] sm:$0xff] }
  0x8a   :  { %v726_v8 = vld [vmem:[#allocation2 + $0x26] sm:$0xff]  ;;  %v2303_v11 = vld [vmem:[%s3758_s2 + $0xd0] sm:$0xf] }
  0x8b   :  { %2609 = vmatmul.mubr.msk.f32.vlgmr.msra.gmra.mrb[0].mxu0 %vm73_vm5, %v3293_v26  ;;  %v835_v9 = vld [vmem:[#allocation2 + $0x7] sm:$0xff]  ;;  %v837_v12 = vld [vmem:[#allocation2 + $0x1f] sm:$0xff] }
  0x8c   :  { %2907 = vmatpush3.bf16.msra.mxu0 %v2904_v22  ;;  %2611 = vmatprep.mubr.msk.f32.mxu0 %vm73_vm5, %v60_v29  ;;  %v838_v13 = vld [vmem:[#allocation2 + $0x27] sm:$0xff]  ;;  %v2313_v22 = vld [vmem:[%s3759_s3 + $0x58] sm:$0xff] }
  0x8d   :  { %2618 = vmatprep.subr.msk.mxu0 %vm86_vm3, %v2255_v25  ;;  %v950_v15 = vld [vmem:[#allocation2 + $0x28] sm:$0xff]  ;;  %v2328_v18 = vld [vmem:[%s3759_s3 + $0x80] sm:$0xff]  ;;  %v2936_v24 = vpack.c.bf16 %v2313_v22, %v2312_v21  ;;  %v2347_v22 = vld [vmem:[%s3759_s3 + $0xf0] sm:$0xff] }
  0x8e   :  { %v2311_v17 = vld [vmem:[%s3759_s3 + $0x48] sm:$0xff]  ;;  %v2968_v23 = vpack.c.bf16 %v2329_v20, %v2328_v18 }
  0x8f   :  { %2612 = vmatmul.mubr.msk.f32.gmra.mrb[2].mxu0 %vm73_vm5, %v3305_v31  ;;  %v2932_v19 = vpack.c.bf16 %v2311_v17, %v2310_v16  ;;  %v2315_v29 = vld [vmem:[%s3759_s3 + $0x68] sm:$0xff] }
  0x90   :  { %2619 = vmatpush3.msk.msra.mxu0 %vm86_vm3, %v2255_v25  ;;  %2620 = vmatprep.mubr.msk.f32.mxu0 %vm73_vm5, %v275_v32  ;;  %v2330_v25 = vld [vmem:[%s3759_s3 + $0x90] sm:$0xff]  ;;  %v2333_v32 = vld [vmem:[%s3759_s3 + $0xa8] sm:$0xff] }
  0x91   :  { %2909 = vmatprep.subr.bf16.mxu0 %v2908_v30  ;;  %2969 = vmatprep.subr.bf16.mxu1 %v2968_v23 }
  0x92   :  { %2971 = vmatpush3.bf16.msra.mxu1 %v2968_v23  ;;  %v2348_v23 = vld [vmem:[%s3759_s3 + $0xf8] sm:$0xf] }
  0x93   :  { %2621 = vmatmul.mubr.msk.f32.vlgmr.msra.gmra.mrb[0].mxu0 %vm73_vm5, %v276_v34  ;;  %v2316_v34 = vld [vmem:[%s3759_s3 + $0x70] sm:$0xff] }
  0x94   :  { %2911 = vmatpush3.bf16.msra.mxu0 %v2908_v30  ;;  %2623 = vmatprep.mubr.msk.f32.mxu0 %vm73_vm5, %v277_v37  ;;  %v2332_v30 = vld [vmem:[%s3759_s3 + $0xa0] sm:$0xff] }
  0x95   :  { %2630 = vmatprep.subr.msk.mxu0 %vm86_vm3, %v2263_v33  ;;  %v2309_v37 = vld [vmem:[%s3757_s1] ss:$0 sm:$0xff] }
  0x97   :  { %2624 = vmatmul.mubr.msk.f32.gmra.mrb[2].mxu0 %vm73_vm5, %v278_v39 }
  0x98   :  { %2631 = vmatpush3.msk.msra.mxu0 %vm86_vm3, %v2263_v33  ;;  %2632 = vmatprep.mubr.msk.f32.mxu0 %vm73_vm5, %v387_v40  ;;  %v2976_v33 = vpack.c.bf16 %v2333_v32, %v2332_v30  ;;  %v2335_v40 = vld [vmem:[%s3759_s3 + $0xb8] sm:$0xf] }
  0x99   :  { %2913 = vmatprep.subr.bf16.mxu0 %v2912_v38  ;;  %v2357_v32 = vld [vmem:[%s3759_s3 + $0x118] sm:$0xff] }
  0x9b   :  { %2633 = vmatmul.mubr.msk.f32.vlgmr.msra.gmra.mrb[0].mxu0 %vm73_vm5, %v388_v42 }
  0x9c   :  { %2915 = vmatpush3.bf16.msra.mxu0 %v2912_v38  ;;  %2635 = vmatprep.mubr.msk.f32.mxu0 %vm73_vm5, %v389_v45  ;;  %v2944_v38 = vpack.c.bf16 %v2317_v35, %v2316_v34  ;;  %v1114_v45 = vld [vmem:[%s3759_s3] sm:$0xff] }
  0x9d   :  { %2642 = vmatprep.subr.msk.mxu0 %vm86_vm3, %v2271_v41 }
  0x9f   :  { %2636 = vmatmul.mubr.msk.f32.gmra.mrb[2].mxu0 %vm73_vm5, %v390_v47 }
  0xa0   :  { %2643 = vmatpush3.msk.msra.mxu0 %vm86_vm3, %v2271_v41  ;;  %2644 = vmatprep.mubr.msk.f32.mxu0 %vm73_vm5, %v499_v48  ;;  %v2980_v41 = vpack.c.bf16 %v2335_v40, %v2334_v36  ;;  %v2950_v48 = vpack.c.bf16 %v1115_v5, %v1114_v45  ;;  %v2358_v36 = vld [vmem:[%s3759_s3 + $0x120] sm:$0xff]  ;;  %v2359_v40 = vld [vmem:[%s3759_s3 + $0x128] sm:$0xff]  ;;  %v2360_v45 = vld [vmem:[%s3759_s3 + $0x130] sm:$0xff] }
  0xa1   :  { %2917 = vmatprep.subr.bf16.mxu0 %v2916_v46  ;;  %v2361_v5 = vld [vmem:[%s3759_s3 + $0x138] sm:$0xf] }
  0xa3   :  { %2645 = vmatmul.mubr.msk.f32.vlgmr.msra.gmra.mrb[0].mxu0 %vm73_vm5, %v500_v50 }
  0xa4   :  { %2919 = vmatpush3.bf16.msra.mxu0 %v2916_v46  ;;  %2647 = vmatprep.mubr.msk.f32.mxu0 %vm73_vm5, %v501_v53  ;;  %v2341_v46 = vld [vmem:[%s3759_s3 + $0xc0] sm:$0xff] }
  0xa5   :  { %2654 = vmatprep.subr.msk.mxu0 %vm86_vm3, %v2279_v49 }
  0xa7   :  { %2648 = vmatmul.mubr.msk.f32.gmra.mrb[2].mxu0 %vm73_vm5, %v502_v55 }
  0xa8   :  { %2655 = vmatpush3.msk.msra.mxu0 %vm86_vm3, %v2279_v49  ;;  %2656 = vmatprep.mubr.msk.f32.mxu0 %vm73_vm5, %v611_v56  ;;  %v2342_v49 = vld [vmem:[%s3759_s3 + $0xc8] sm:$0xff] }
  0xa9   :  { %2921 = vmatprep.subr.bf16.mxu0 %v2920_v54  ;;  %v2986_v51 = vpack.c.bf16 %v2342_v49, %v2341_v46  ;;  %v3016_v46 = vpack.c.bf16 %v2361_v5, %v2360_v45 }
  0xab   :  { %2657 = vmatmul.mubr.msk.f32.vlgmr.msra.gmra.mrb[0].mxu0 %vm73_vm5, %v612_v58 }
  0xac   :  { %2923 = vmatpush3.bf16.msra.mxu0 %v2920_v54  ;;  %2659 = vmatprep.mubr.msk.f32.mxu0 %vm73_vm5, %v613_v61 }
  0xad   :  { %2666 = vmatprep.subr.msk.mxu0 %vm86_vm3, %v2287_v57 }
  0xaf   :  { %2660 = vmatmul.mubr.msk.f32.gmra.mrb[2].mxu0 %vm73_vm5, %v614_v63  ;;  %v1116_v63 = vld [vmem:[%s3759_s3 + $0x10] sm:$0xff] }
  0xb0   :  { %2667 = vmatpush3.msk.msra.mxu0 %vm86_vm3, %v2287_v57  ;;  %2668 = vmatprep.mubr.msk.f32.mxu0 %vm73_vm5, %v723_v0  ;;  %v1117_v0 = vld [vmem:[%s3759_s3 + $0x18] sm:$0xff] }
  0xb1   :  { %2925 = vmatprep.subr.bf16.mxu0 %v2924_v62 }
  0xb3   :  { %2669 = vmatmul.mubr.msk.f32.vlgmr.msra.gmra.mrb[0].mxu0 %vm73_vm5, %v724_v2  ;;  %v2344_v2 = vld [vmem:[%s3759_s3 + $0xd8] sm:$0xff] }
  0xb4   :  { %2927 = vmatpush3.bf16.msra.mxu0 %v2924_v62  ;;  %2671 = vmatprep.mubr.msk.f32.mxu0 %vm73_vm5, %v725_v6 }
  0xb5   :  { %2678 = vmatprep.subr.msk.mxu0 %vm86_vm3, %v2295_v1 }
  0xb7   :  { %2672 = vmatmul.mubr.msk.f32.gmra.mrb[2].mxu0 %vm73_vm5, %v726_v8 }
  0xb8   :  { %2679 = vmatpush3.msk.msra.mxu0 %vm86_vm3, %v2295_v1  ;;  %2680 = vmatprep.mubr.msk.f32.mxu0 %vm73_vm5, %v835_v9  ;;  %v2343_v1 = vld [vmem:[%s3759_s3 + $0xd0] sm:$0xff] }
  0xb9   :  { %2929 = vmatprep.subr.bf16.mxu0 %v2928_v7  ;;  %v2990_v8 = vpack.c.bf16 %v2344_v2, %v2343_v1  ;;  %v2382_v2 = vld [vmem:[%s3759_s3 + $0x190] sm:$0xff] }
  0xbb   :  { %2681 = vmatmul.mubr.msk.f32.vlgmr.msra.gmra.mrb[0].mxu0 %vm73_vm5, %v836_v10  ;;  %v1118_v10 = vld [vmem:[%s3759_s3 + $0x20] sm:$0xff] }
  0xbc   :  { %2931 = vmatpush3.bf16.msra.mxu0 %v2928_v7  ;;  %2683 = vmatprep.mubr.msk.f32.mxu0 %vm73_vm5, %v837_v12  ;;  %v2954_v7 = vpack.c.bf16 %v1117_v0, %v1116_v63  ;;  %v2345_v12 = vld [vmem:[%s3759_s3 + $0xe0] sm:$0xff]  ;;  %v2381_v0 = vld [vmem:[%s3759_s3 + $0x188] sm:$0xff] }
  0xbd   :  { %2690 = vmatprep.subr.msk.mxu0 %vm86_vm3, %v2303_v11  ;;  %v2380_v63 = vld [vmem:[%s3759_s3 + $0x180] sm:$0xff] }
  0xbe   :  { %v3040_v1 = vpack.c.bf16 %v2381_v0, %v2380_v63 }
  0xbf   :  { %2684 = vmatmul.mubr.msk.f32.gmra.mrb[2].mxu0 %vm73_vm5, %v838_v13  ;;  %v2346_v13 = vld [vmem:[%s3759_s3 + $0xe8] sm:$0xff] }
  0xc0   :  { %2691 = vmatpush3.msk.msra.mxu0 %vm86_vm3, %v2303_v11  ;;  %2692 = vmatprep.mubr.msk.f32.mxu0 %vm73_vm5, %v3293_v26  ;;  %v2331_v26 = vld [vmem:[%s3759_s3 + $0x98] sm:$0xff]  ;;  %v1119_v11 = vld [vmem:[%s3759_s3 + $0x28] sm:$0xff]  ;;  %v2994_v21 = vpack.c.bf16 %v2346_v13, %v2345_v12  ;;  %v2386_v12 = vld [vmem:[%s3759_s3 + $0x1b0] sm:$0xff] }
  0xc1   :  { %2933 = vmatprep.subr.bf16.mxu0 %v2932_v19  ;;  %v2972_v27 = vpack.c.bf16 %v2331_v26, %v2330_v25  ;;  %v2958_v20 = vpack.c.bf16 %v1119_v11, %v1118_v10  ;;  %v2387_v13 = vld [vmem:[%s3759_s3 + $0x1b8] sm:$0xf] }
  0xc3   :  { %2693 = vmatmul.mubr.msk.f32.vlgmr.msra.gmra.mrb[0].mxu0 %vm73_vm5, %v948_v14  ;;  %2973 = vmatprep.subr.bf16.mxu1 %v2972_v27  ;;  %v1120_v14 = vld [vmem:[%s3759_s3 + $0x30] sm:$0xff] }
  0xc4   :  { %2695 = vmatprep.mubr.msk.f32.mxu0 %vm73_vm5, %v3305_v31  ;;  %2935 = vmatpush3.bf16.msra.mxu0 %v2932_v19  ;;  %v2940_v31 = vpack.c.bf16 %v2315_v29, %v2314_v28  ;;  %v2354_v28 = vld [vmem:[%s3759_s3 + $0x100] sm:$0xff]  ;;  %v2355_v29 = vld [vmem:[%s3759_s3 + $0x108] sm:$0xff] }
  0xc5   :  { %2937 = vmatprep.subr.bf16.mxu0 %v2936_v24  ;;  %2975 = vmatpush3.bf16.msra.mxu1 %v2972_v27  ;;  %v2998_v27 = vpack.c.bf16 %v2348_v23, %v2347_v22  ;;  %v3004_v30 = vpack.c.bf16 %v2355_v29, %v2354_v28  ;;  %v2397_v23 = vld [vmem:[%s3759_s3 + $0x1e0] sm:$0xff]  ;;  %v2399_v28 = vld [vmem:[%s3759_s3 + $0x1f0] sm:$0xff]  ;;  %v2400_v29 = vld [vmem:[%s3759_s3 + $0x1f8] sm:$0xf] }
  0xc6   :  { %2977 = vmatprep.subr.bf16.mxu1 %v2976_v33 }
  0xc7   :  { %2696 = vmatmul.mubr.msk.f32.gmra.mrb[2].mxu0 %vm73_vm5, %v950_v15  ;;  %v1121_v15 = vld [vmem:[%s3759_s3 + $0x38] sm:$0xf] }
  0xc8   :  { %2939 = vmatpush3.bf16.msra.mxu0 %v2936_v24  ;;  %v2962_v26 = vpack.c.bf16 %v1121_v15, %v1120_v14  ;;  %v3052_v15 = vpack.c.bf16 %v2387_v13, %v2386_v12 }
  0xc9   :  { %2941 = vmatprep.subr.bf16.mxu0 %v2940_v31  ;;  %2979 = vmatpush3.bf16.msra.mxu1 %v2976_v33 }
  0xca   :  { %2982 = vmatprep.subr.msk.bf16.mxu1 %vm3461_vm10, %v2980_v41 }
  0xcc   :  { %2943 = vmatpush3.bf16.msra.mxu0 %v2940_v31  ;;  %v2356_v31 = vld [vmem:[%s3759_s3 + $0x110] sm:$0xff] }
  0xcd   :  { %2946 = vmatprep.subr.msk.bf16.mxu0 %vm3461_vm10, %v2944_v38  ;;  %2985 = vmatpush3.bf16.msk.msra.mxu1 %vm3461_vm10, %v2980_v41  ;;  %v3008_v35 = vpack.c.bf16 %v2357_v32, %v2356_v31  ;;  %v3070_v31 = vpack.c.bf16 %v2400_v29, %v2399_v28  ;;  %v2406_v32 = vld [vmem:[%s3759_s3 + $0x200] sm:$0xff] }
  0xce   :  { %2987 = vmatprep.subr.bf16.mxu1 %v2986_v51 }
  0xd0   :  { %2949 = vmatpush3.bf16.msk.msra.mxu0 %vm3461_vm10, %v2944_v38 }
  0xd1   :  { %2951 = vmatprep.subr.bf16.mxu0 %v2950_v48 }
 0x196   :  { %v2694_v42 = vpop.f32.mrb[0].mxu0 }
 0x197   :  { %v1067_v43 = vadd.f32 %v2694_v42, %v2309_v37  ;;  %v1036_v44 = vpop.f32.mrb[1].mxu0 }
 0x198   :  { %v1066_v47 = vadd.f32 %v2309_v37, %v1036_v44 }
 0x199   :  { %v1071_v50 = vmax.f32 %v1067_v43, 0.0  ;;  %v3012_v43 = vpack.c.bf16 %v2359_v40, %v2358_v36  ;;  %v2408_v36 = vld [vmem:[%s3759_s3 + $0x210] sm:$0xff] }
 0x19a   :  { %v1070_v52 = vmax.f32 %v1066_v47, 0.0  ;;  %v2697_v53 = vpop.f32.mrb[2].mxu0  ;;  %v2367_v47 = vld [vmem:[%s3759_s3 + $0x140] sm:$0xff] }
 0x19b   :  { %v1069_v54 = vadd.f32 %v2697_v53, %v2309_v37  ;;  %1095 = vrot.lane.b32.xlu1 %v1071_v50, %s3200_s13  ;;  %v1046_v55 = vpop.f32.mrb[3].mxu0  ;;  %v2369_v50 = vld [vmem:[%s3759_s3 + $0x150] sm:$0xff] }
 0x19c   :  { %v1068_v56 = vadd.f32 %v2309_v37, %v1046_v55  ;;  %1093 = vrot.lane.b32.xlu0 %v1070_v52, %s3200_s13  ;;  %v2372_v55 = vld [vmem:[%s3759_s3 + $0x168] sm:$0xff] }
 0x19d   :  { %v1073_v57 = vmax.f32 %v1069_v54, 0.0  ;;  %v2371_v54 = vld [vmem:[%s3759_s3 + $0x160] sm:$0xff] }
 0x19e   :  { %v1072_v58 = vmax.f32 %v1068_v56, 0.0 }
 0x19f   :  { %1099 = vrot.lane.b32.xlu1 %v1073_v57, %s3200_s13  ;;  %v3030_v57 = vpack.c.bf16 %v2372_v55, %v2371_v54 }
 0x1a0   :  { %1097 = vrot.lane.b32.xlu0 %v1072_v58, %s3200_s13 }
 0x20d   :  { %v1096_v59 = vpop.permute.xlu1 %1095 }
 0x20e   :  { %1107 = vst.msk [vmem:[#allocation3 + $0xc] sm:$0xff] %vm1105_vm11, %v1096_v59  ;;  %v1094_v60 = vpop.permute.xlu0 %1093  ;;  %v2373_v59 = vld [vmem:[%s3759_s3 + $0x170] sm:$0xff] }
 0x20f   :  { %1106 = vst.msk [vmem:[#allocation3 + $0x4] sm:$0xff] %vm1105_vm11, %v1094_v60  ;;  %v2374_v60 = vld [vmem:[%s3759_s3 + $0x178] sm:$0xf] }
 0x211   :  { %v1100_v61 = vpop.permute.xlu1 %1099 }
 0x212   :  { %1109 = vst.msk [vmem:[#allocation3 + $0x24] sm:$0xff] %vm1105_vm11, %v1100_v61  ;;  %v1098_v62 = vpop.permute.xlu0 %1097 }
 0x213   :  { %1108 = vst.msk [vmem:[#allocation3 + $0x1c] sm:$0xff] %vm1105_vm11, %v1098_v62  ;;  %v3034_v62 = vpack.c.bf16 %v2374_v60, %v2373_v59 }
 0x215   :  { %v1571_v53 = vld [vmem:[#allocation3 + $0xc] sm:$0xff] }
 0x216   :  { %v1122_v3 = vld [vmem:[#allocation3 + $0x1] sm:$0xff]  ;;  %v1123_v6 = vld [vmem:[#allocation3 + $0x9] sm:$0xff] }
 0x217   :  { %v1336_v4 = vld [vmem:[#allocation3 + $0x2] sm:$0xff]  ;;  %2714 = vmatprep.mubr.msk.f32.mxu0 %vm1135_vm12, %v1122_v3  ;;  %v1337_v9 = vld [vmem:[#allocation3 + $0xa] sm:$0xff] }
 0x218   :  { %2758 = vmatprep.mubr.msk.f32.mxu1 %vm1135_vm12, %v1336_v4  ;;  %2715 = vmatmul.mubr.msk.f32.vlgmr.msra.gmra.mrb[4].mxu0 %vm1135_vm12, %v1123_v6  ;;  %v1110_v24 = vld [vmem:[#allocation3] sm:$0xff]  ;;  %v3558_v33 = vld [vmem:[#allocation3 + $0x8] sm:$0xff] }
 0x219   :  { %2759 = vmatmul.mubr.msk.f32.vlgmr.msra.gmra.mrb[0].mxu1 %vm1135_vm12, %v1337_v9  ;;  %2953 = vmatpush3.bf16.msra.mxu0 %v2950_v48  ;;  %v1453_v25 = vld [vmem:[#allocation3 + $0x3] sm:$0xff]  ;;  %v1454_v34 = vld [vmem:[#allocation3 + $0xb] sm:$0xff]  ;;  %v2368_v48 = vld [vmem:[%s3759_s3 + $0x148] sm:$0xff] }
 0x21a   :  { %2989 = vmatpush3.bf16.msra.mxu1 %v2986_v51  ;;  %v1124_v16 = vld [vmem:[#allocation3 + $0x19] sm:$0xff]  ;;  %2955 = vmatprep.subr.bf16.mxu0 %v2954_v7  ;;  %v1125_v18 = vld [vmem:[#allocation3 + $0x21] sm:$0xff]  ;;  %v3022_v49 = vpack.c.bf16 %v2368_v48, %v2367_v47  ;;  %v1688_v6 = vld [vmem:[#allocation3 + $0xd] sm:$0xff] }
 0x21b   :  { %v1338_v17 = vld [vmem:[#allocation3 + $0x1a] sm:$0xff]  ;;  %2991 = vmatprep.subr.bf16.mxu1 %v2990_v8  ;;  %2717 = vmatprep.mubr.msk.f32.mxu0 %vm1135_vm12, %v1124_v16  ;;  %v1339_v19 = vld [vmem:[#allocation3 + $0x22] sm:$0xff]  ;;  %v2393_v16 = vld [vmem:[%s3759_s3 + $0x1c0] sm:$0xff] }
 0x21c   :  { %2761 = vmatprep.mubr.msk.f32.mxu1 %vm1135_vm12, %v1338_v17  ;;  %2718 = vmatmul.mubr.msk.f32.gmra.mrb[6].mxu0 %vm1135_vm12, %v1125_v18  ;;  %v1112_v37 = vld [vmem:[#allocation3 + $0x18] sm:$0xff]  ;;  %v3571_v41 = vld [vmem:[#allocation3 + $0x20] sm:$0xff]  ;;  %v2370_v51 = vld [vmem:[%s3759_s3 + $0x158] sm:$0xff] }
 0x21d   :  { %2762 = vmatmul.mubr.msk.f32.gmra.mrb[2].mxu1 %vm1135_vm12, %v1339_v19  ;;  %2957 = vmatpush3.bf16.msra.mxu0 %v2954_v7  ;;  %v1455_v38 = vld [vmem:[#allocation3 + $0x1b] sm:$0xff]  ;;  %v1456_v42 = vld [vmem:[#allocation3 + $0x23] sm:$0xff]  ;;  %v3026_v52 = vpack.c.bf16 %v2370_v51, %v2369_v50  ;;  %v2384_v7 = vld [vmem:[%s3759_s3 + $0x1a0] sm:$0xff] }
 0x21e   :  { %2993 = vmatpush3.bf16.msra.mxu1 %v2990_v8  ;;  %2736 = vmatprep.mubr.msk.f32.mxu0 %vm1135_vm12, %v1110_v24  ;;  %v1570_v44 = vld [vmem:[#allocation3 + $0x4] sm:$0xff]  ;;  %v1572_v56 = vld [vmem:[#allocation3 + $0x1c] sm:$0xff]  ;;  %v1805_v22 = vld [vmem:[#allocation3 + $0xe] sm:$0xff] }
 0x21f   :  { %2780 = vmatprep.mubr.msk.f32.mxu1 %vm1135_vm12, %v1453_v25  ;;  %2959 = vmatprep.subr.bf16.mxu0 %v2958_v20  ;;  %v1573_v58 = vld [vmem:[#allocation3 + $0x24] sm:$0xff]  ;;  %v2385_v8 = vld [vmem:[%s3759_s3 + $0x1a8] sm:$0xff]  ;;  %v1922_v40 = vld [vmem:[#allocation3 + $0xf] sm:$0xff] }
 0x220   :  { %2995 = vmatprep.subr.bf16.mxu1 %v2994_v21  ;;  %v1687_v61 = vld [vmem:[#allocation3 + $0x5] sm:$0xff]  ;;  %v1689_v9 = vld [vmem:[#allocation3 + $0x1d] sm:$0xff]  ;;  %v3048_v10 = vpack.c.bf16 %v2385_v8, %v2384_v7 }
 0x221   :  { %2961 = vmatpush3.bf16.msra.mxu0 %v2958_v20  ;;  %v2383_v3 = vld [vmem:[%s3759_s3 + $0x198] sm:$0xff]  ;;  %v2394_v17 = vld [vmem:[%s3759_s3 + $0x1c8] sm:$0xff]  ;;  %v2395_v19 = vld [vmem:[%s3759_s3 + $0x1d0] sm:$0xff] }
 0x222   :  { %2997 = vmatpush3.bf16.msra.mxu1 %v2994_v21  ;;  %2964 = vmatprep.subr.msk.bf16.mxu0 %vm3461_vm10, %v2962_v26  ;;  %v3044_v4 = vpack.c.bf16 %v2383_v3, %v2382_v2  ;;  %v1690_v11 = vld [vmem:[#allocation3 + $0x25] sm:$0xff]  ;;  %v3058_v18 = vpack.c.bf16 %v2394_v17, %v2393_v16  ;;  %v2398_v24 = vld [vmem:[%s3759_s3 + $0x1e8] sm:$0xff] }
 0x223   :  { %3000 = vmatprep.subr.msk.bf16.mxu1 %vm3461_vm10, %v2998_v27  ;;  %v1804_v14 = vld [vmem:[#allocation3 + $0x6] sm:$0xff]  ;;  %v1806_v25 = vld [vmem:[#allocation3 + $0x1e] sm:$0xff] }
 0x224   :  { %v2396_v20 = vld [vmem:[%s3759_s3 + $0x1d8] sm:$0xff] }
 0x225   :  { %2967 = vmatpush3.bf16.msk.msra.mxu0 %vm3461_vm10, %v2962_v26  ;;  %v3062_v21 = vpack.c.bf16 %v2396_v20, %v2395_v19  ;;  %v3066_v26 = vpack.c.bf16 %v2398_v24, %v2397_v23  ;;  %v1924_v5 = vld [vmem:[#allocation3 + $0x27] sm:$0xff] }
 0x226   :  { %3003 = vmatpush3.bf16.msk.msra.mxu1 %vm3461_vm10, %v2998_v27  ;;  %v1807_v27 = vld [vmem:[#allocation3 + $0x26] sm:$0xff] }
 0x227   :  { %3005 = vmatprep.subr.bf16.mxu1 %v3004_v30  ;;  %v2413_v47 = vld [vmem:[%s3759_s3 + $0x238] sm:$0xf] }
 0x228   :  { %2737 = vmatmul.mubr.msk.f32.vlgmr.msra.gmra.mrb[4].mxu0 %vm1135_vm12, %v3558_v33  ;;  %v2041_v50 = vld [vmem:[#allocation3 + $0x28] sm:$0xff] }
 0x229   :  { %2781 = vmatmul.mubr.msk.f32.vlgmr.msra.gmra.mrb[0].mxu1 %vm1135_vm12, %v1454_v34  ;;  %2739 = vmatprep.mubr.msk.f32.mxu0 %vm1135_vm12, %v1112_v37  ;;  %v2407_v34 = vld [vmem:[%s3759_s3 + $0x208] sm:$0xff]  ;;  %v2409_v37 = vld [vmem:[%s3759_s3 + $0x218] sm:$0xff] }
 0x22a   :  { %2783 = vmatprep.mubr.msk.f32.mxu1 %vm1135_vm12, %v1455_v38  ;;  %3007 = vmatpush3.bf16.msra.mxu1 %v3004_v30  ;;  %v1921_v30 = vld [vmem:[#allocation3 + $0x7] sm:$0xff]  ;;  %v3080_v38 = vpack.c.bf16 %v2409_v37, %v2408_v36  ;;  %v2212_v37 = vld [vmem:[%s3756_s0] sm:$0xff] }
 0x22b   :  { %3009 = vmatprep.subr.bf16.mxu1 %v3008_v35 }
 0x22c   :  { %2740 = vmatmul.mubr.msk.f32.gmra.mrb[6].mxu0 %vm1135_vm12, %v3571_v41 }
 0x22d   :  { %2784 = vmatmul.mubr.msk.f32.gmra.mrb[2].mxu1 %vm1135_vm12, %v1456_v42  ;;  %v2410_v42 = vld [vmem:[%s3759_s3 + $0x220] sm:$0xff] }
 0x22e   :  { %2802 = vmatprep.mubr.msk.f32.mxu1 %vm1135_vm12, %v1570_v44  ;;  %3011 = vmatpush3.bf16.msra.mxu1 %v3008_v35  ;;  %v3076_v35 = vpack.c.bf16 %v2407_v34, %v2406_v32  ;;  %v1923_v44 = vld [vmem:[#allocation3 + $0x1f] sm:$0xff] }
 0x22f   :  { %3013 = vmatprep.subr.bf16.mxu1 %v3012_v43 }
 0x232   :  { %3015 = vmatpush3.bf16.msra.mxu1 %v3012_v43  ;;  %v2411_v43 = vld [vmem:[%s3759_s3 + $0x228] sm:$0xff] }
 0x233   :  { %3018 = vmatprep.subr.msk.bf16.mxu1 %vm3461_vm10, %v3016_v46  ;;  %v3084_v45 = vpack.c.bf16 %v2411_v43, %v2410_v42  ;;  %v2214_v42 = vld [vmem:[%s3756_s0 + $0x10] sm:$0xff]  ;;  %v2215_v43 = vld [vmem:[%s3756_s0 + $0x18] sm:$0xff] }
 0x236   :  { %3021 = vmatpush3.bf16.msk.msra.mxu1 %vm3461_vm10, %v3016_v46  ;;  %v2412_v46 = vld [vmem:[%s3759_s3 + $0x230] sm:$0xff] }
 0x237   :  { %3023 = vmatprep.subr.bf16.mxu1 %v3022_v49  ;;  %v3088_v48 = vpack.c.bf16 %v2413_v47, %v2412_v46 }
 0x239   :  { %2803 = vmatmul.mubr.msk.f32.vlgmr.msra.gmra.mrb[0].mxu1 %vm1135_vm12, %v1571_v53 }
 0x23a   :  { %2805 = vmatprep.mubr.msk.f32.mxu1 %vm1135_vm12, %v1572_v56  ;;  %3025 = vmatpush3.bf16.msra.mxu1 %v3022_v49  ;;  %v2039_v49 = vld [vmem:[#allocation3 + $0x10] sm:$0xff] }
 0x23b   :  { %3027 = vmatprep.subr.bf16.mxu1 %v3026_v52 }
 0x23d   :  { %2806 = vmatmul.mubr.msk.f32.gmra.mrb[2].mxu1 %vm1135_vm12, %v1573_v58 }
 0x23e   :  { %3029 = vmatpush3.bf16.msra.mxu1 %v3026_v52  ;;  %2824 = vmatprep.mubr.msk.f32.mxu1 %vm1135_vm12, %v1687_v61 }
 0x23f   :  { %3031 = vmatprep.subr.bf16.mxu1 %v3030_v57 }
 0x242   :  { %3033 = vmatpush3.bf16.msra.mxu1 %v3030_v57 }
 0x243   :  { %3036 = vmatprep.subr.msk.bf16.mxu1 %vm3461_vm10, %v3034_v62 }
 0x246   :  { %3039 = vmatpush3.bf16.msk.msra.mxu1 %vm3461_vm10, %v3034_v62 }
 0x247   :  { %3041 = vmatprep.subr.bf16.mxu1 %v3040_v1 }
 0x249   :  { %2825 = vmatmul.mubr.msk.f32.vlgmr.msra.gmra.mrb[0].mxu1 %vm1135_vm12, %v1688_v6 }
 0x24a   :  { %2827 = vmatprep.mubr.msk.f32.mxu1 %vm1135_vm12, %v1689_v9  ;;  %3043 = vmatpush3.bf16.msra.mxu1 %v3040_v1 }
 0x24b   :  { %3045 = vmatprep.subr.bf16.mxu1 %v3044_v4 }
 0x24d   :  { %2828 = vmatmul.mubr.msk.f32.gmra.mrb[2].mxu1 %vm1135_vm12, %v1690_v11 }
 0x24e   :  { %3047 = vmatpush3.bf16.msra.mxu1 %v3044_v4  ;;  %2846 = vmatprep.mubr.msk.f32.mxu1 %vm1135_vm12, %v1804_v14 }
 0x24f   :  { %3049 = vmatprep.subr.bf16.mxu1 %v3048_v10 }
 0x252   :  { %3051 = vmatpush3.bf16.msra.mxu1 %v3048_v10 }
 0x253   :  { %3054 = vmatprep.subr.msk.bf16.mxu1 %vm3461_vm10, %v3052_v15 }
 0x256   :  { %3057 = vmatpush3.bf16.msk.msra.mxu1 %vm3461_vm10, %v3052_v15 }
 0x257   :  { %3059 = vmatprep.subr.bf16.mxu1 %v3058_v18 }
 0x259   :  { %2847 = vmatmul.mubr.msk.f32.vlgmr.msra.gmra.mrb[0].mxu1 %vm1135_vm12, %v1805_v22 }
 0x25a   :  { %2849 = vmatprep.mubr.msk.f32.mxu1 %vm1135_vm12, %v1806_v25  ;;  %3061 = vmatpush3.bf16.msra.mxu1 %v3058_v18 }
 0x25b   :  { %3063 = vmatprep.subr.bf16.mxu1 %v3062_v21 }
 0x25d   :  { %2850 = vmatmul.mubr.msk.f32.gmra.mrb[2].mxu1 %vm1135_vm12, %v1807_v27 }
 0x25e   :  { %3065 = vmatpush3.bf16.msra.mxu1 %v3062_v21  ;;  %2868 = vmatprep.mubr.msk.f32.mxu1 %vm1135_vm12, %v1921_v30 }
 0x25f   :  { %3067 = vmatprep.subr.bf16.mxu1 %v3066_v26 }
 0x262   :  { %3069 = vmatpush3.bf16.msra.mxu1 %v3066_v26 }
 0x263   :  { %3072 = vmatprep.subr.msk.bf16.mxu1 %vm3461_vm10, %v3070_v31 }
 0x266   :  { %3075 = vmatpush3.bf16.msk.msra.mxu1 %vm3461_vm10, %v3070_v31 }
 0x267   :  { %3077 = vmatprep.subr.bf16.mxu1 %v3076_v35 }
 0x269   :  { %2869 = vmatmul.mubr.msk.f32.vlgmr.msra.gmra.mrb[0].mxu1 %vm1135_vm12, %v1922_v40  ;;  %v2213_v40 = vld [vmem:[%s3756_s0 + $0x8] sm:$0xff]  ;;  %s3173_s0 = scalar_lea.vmem %s2230_s20, 512 }
 0x26a   :  { %2871 = vmatprep.mubr.msk.f32.mxu1 %vm1135_vm12, %v1923_v44  ;;  %3079 = vmatpush3.bf16.msra.mxu1 %v3076_v35  ;;  %p3174_p0 = scmp.ne.s32.totalorder %s2230_s20, %s3173_s0  ;;  %p3179_p2 = scmp.lt.s32.totalorder %s3173_s0, %s3173_s0 }
 0x26b   :  { %3081 = vmatprep.subr.bf16.mxu1 %v3080_v38 }
 0x26c   :  { %p3180_p3 = por %p3179_p2, %p3178_p1 }
 0x26d   :  { %2872 = vmatmul.mubr.msk.f32.gmra.mrb[2].mxu1 %vm1135_vm12, %v1924_v5 }
 0x26e   :  { %3083 = vmatpush3.bf16.msra.mxu1 %v3080_v38  ;;  %2890 = vmatprep.mubr.msk.f32.mxu1 %vm1135_vm12, %v3558_v33  ;;  %p3181_p4 = pnand %p3180_p3, %p3174_p0 }
 0x26f   :  { %3085 = vmatprep.subr.bf16.mxu1 %v3084_v45 }
 0x272   :  { %3087 = vmatpush3.bf16.msra.mxu1 %v3084_v45 }
 0x273   :  { %3090 = vmatprep.subr.msk.bf16.mxu1 %vm3461_vm10, %v3088_v48 }
 0x276   :  { %3093 = vmatpush3.bf16.msk.msra.mxu1 %vm3461_vm10, %v3088_v48 }
 0x279   :  { %2891 = vmatmul.mubr.msk.f32.vlgmr.msra.gmra.mrb[0].mxu1 %vm1135_vm12, %v2039_v49 }
 0x27a   :  { %2893 = vmatprep.mubr.msk.f32.mxu1 %vm1135_vm12, %v3571_v41 }
 0x27d   :  { %2894 = vmatmul.mubr.msk.f32.gmra.mrb[2].mxu1 %vm1135_vm12, %v2041_v50 }
 0x2fb   :  { %v2738_v51 = vpop.f32.mrb[4].mxu0 }
 0x2fc   :  { %v1317_v33 = vpop.f32.mrb[5].mxu0 }
 0x2ff   :  { %v2741_v52 = vpop.f32.mrb[6].mxu0 }
 0x300   :  { %v1327_v53 = vpop.f32.mrb[7].mxu0 }
 0x34c   :  { %v2892_v54 = vpop.f32.mrb[0].mxu1 }
 0x34d   :  { %v3094_v55 = vadd.f32 %v2892_v54, %v2738_v51  ;;  %v2132_v56 = vpop.f32.mrb[1].mxu1 }
 0x34e   :  { %v3095_v57 = vadd.f32 %v2132_v56, %v1317_v33 }
 0x34f   :  { %v2157_v39 = vsel %vm2155_vm13, %v3094_v55, 0.0 }
 0x350   :  { %v2156_v58 = vsel %vm2155_vm13, %v3095_v57, 0.0  ;;  %v2895_v59 = vpop.f32.mrb[2].mxu1 }
 0x351   :  { %v3096_v60 = vadd.f32 %v2895_v59, %v2741_v52  ;;  %v2142_v61 = vpop.f32.mrb[3].mxu1  ;;  %v2158_v62 = vadd.f32 %v2157_v39, %v2156_v58 }
 0x352   :  { %v3097_v41 = vadd.f32 %v2142_v61, %v1327_v53 }
 0x353   :  { %v2161_v1 = vsel %vm2155_vm13, %v3096_v60, 0.0 }
 0x354   :  { %v2159_v63 = vsel %vm2155_vm13, %v3097_v41, 0.0 }
 0x355   :  { %v2160_v0 = vadd.f32 %v2159_v63, %v2158_v62 }
 0x357   :  { %v2162_v2 = vadd.f32 %v2161_v1, %v2160_v0 }
 0x359   :  { %2163 = vadd.xlane.f32.xlu0 %v2162_v2 }
 0x3e6   :  { %v2164_v3 = vpop.xlane.xlu0 %2163 }
 0x3e7   :  { %v2165_v4 = vrot.slane %v2164_v3, 4 }
 0x3e9   :  { %v2166_v6 = vadd.f32 %v2165_v4, %v2164_v3 }
 0x3eb   :  { %v2167_v7 = vrot.slane %v2166_v6, 2 }
 0x3ed   :  { %v2168_v8 = vadd.f32 %v2167_v7, %v2166_v6 }
 0x3ef   :  { %v2169_v9 = vrot.slane %v2168_v8, 1 }
 0x3f1   :  { %v2170_v10 = vadd.f32 %v2169_v9, %v2168_v8 }
 0x3f3   :  { %3158 = vpush %v2170_v10 }
 0x424   :  { %s3159_s3 = spop %3158 }
 0x425   :  { %s2174_s6 = smul.f32 0.001953125, %s3159_s3 }
 0x427   :  { %v2175_v11 = vstv %s2174_s6 }
 0x428   :  { %v2176_v12 = vsub.f32 %v3095_v57, %v2175_v11  ;;  %v2177_v13 = vsub.f32 %v3094_v55, %v2175_v11  ;;  %v2178_v14 = vsub.f32 %v3097_v41, %v2175_v11  ;;  %v2179_v15 = vsub.f32 %v3096_v60, %v2175_v11 }
 0x42a   :  { %v2180_v16 = vmul.f32 %v2176_v12, %v2176_v12  ;;  %v2181_v17 = vmul.f32 %v2177_v13, %v2177_v13  ;;  %v2182_v18 = vmul.f32 %v2178_v14, %v2178_v14  ;;  %v2183_v19 = vmul.f32 %v2179_v15, %v2179_v15 }
 0x42c   :  { %v2184_v20 = vsel %vm2155_vm13, %v2180_v16, 0.0  ;;  %v2185_v21 = vsel %vm2155_vm13, %v2181_v17, 0.0  ;;  %v2187_v23 = vsel %vm2155_vm13, %v2182_v18, 0.0  ;;  %v2189_v25 = vsel %vm2155_vm13, %v2183_v19, 0.0 }
 0x42d   :  { %v2186_v22 = vadd.f32 %v2185_v21, %v2184_v20 }
 0x42f   :  { %v2188_v24 = vadd.f32 %v2187_v23, %v2186_v22 }
 0x431   :  { %v2190_v26 = vadd.f32 %v2189_v25, %v2188_v24 }
 0x433   :  { %2191 = vadd.xlane.f32.xlu1 %v2190_v26 }
 0x4c0   :  { %v2192_v27 = vpop.xlane.xlu1 %2191 }
 0x4c1   :  { %v2193_v28 = vrot.slane %v2192_v27, 4 }
 0x4c3   :  { %v2194_v29 = vadd.f32 %v2193_v28, %v2192_v27 }
 0x4c5   :  { %v2195_v30 = vrot.slane %v2194_v29, 2 }
 0x4c7   :  { %v2196_v31 = vadd.f32 %v2195_v30, %v2194_v29 }
 0x4c9   :  { %v2197_v32 = vrot.slane %v2196_v31, 1 }
 0x4cb   :  { %v2198_v34 = vadd.f32 %v2197_v32, %v2196_v31 }
 0x4cd   :  { %3160 = vpush %v2198_v34 }
 0x4fe   :  { %s3161_s7 = spop %3160 }
 0x4ff   :  { %s2202_s8 = smul.f32 0.001953125, %s3161_s7 }
 0x501   :  { %s2203_s9 = sadd.f32 1e-05, %s2202_s8 }
 0x503   :  { %v2204_v35 = vstv %s2203_s9 }
 0x504   :  { %3171 = vrsqrt.f32 %v2204_v35 }
 0x50e   :  { %v3172_v36 = vpop.eup %3171 }
 0x50f   :  { %3162 = vpush %v3172_v36 }
 0x540   :  { %s3163_s10 = spop %3162 }
 0x541   :  { %v2207_v38 = vstv %s3163_s10 }
 0x542   :  { %v2208_v44 = vmul.f32 %v2207_v38, %v2176_v12  ;;  %v2209_v45 = vmul.f32 %v2207_v38, %v2177_v13  ;;  %v2210_v5 = vmul.f32 %v2207_v38, %v2178_v14  ;;  %v2211_v46 = vmul.f32 %v2207_v38, %v2179_v15 }
 0x544   :  { %v2216_v47 = vadd.f32 %v2212_v37, %v2208_v44  ;;  %v2217_v48 = vadd.f32 %v2213_v40, %v2209_v45  ;;  %v2218_v49 = vadd.f32 %v2214_v42, %v2210_v5  ;;  %v2219_v50 = vadd.f32 %v2215_v43, %v2211_v46 }
 0x546   :  { %2220 = vst.msk [vmem:[#allocation4] sm:$0xff] %vm2155_vm13, %v2216_v47  ;;  %2221 = vst.msk [vmem:[#allocation4 + $0x8] sm:$0xff] %vm2155_vm13, %v2217_v48 }
 0x547   :  { %2222 = vst.msk [vmem:[#allocation4 + $0x10] sm:$0xff] %vm2155_vm13, %v2218_v49  ;;  %2223 = vst.msk [vmem:[#allocation4 + $0x18] sm:$0xff] %vm2155_vm13, %v2219_v50 }
 0x548   :  { %3184 = shalt.err (!%p3181_p4)
}
 0x549   :  { %s3185_s23 = scalar_lea.hbm %s3760_s4, 512 }
 0x54a   :  { %p3186_p5 = scmp.ne.s32.totalorder %s3760_s4, %s3185_s23  ;;  %p3189_p6 = scmp.lt.u32.totalorder %s3185_s23, %s3760_s4 }
 0x54c   :  { %p3191_p7 = pnand %p3189_p6, %p3186_p5 }
 0x54e   :  { %3194 = shalt.err (!%p3191_p7)
}
 0x54f   :  { %s3202_s27 = smov 128   ;;  %s3203_s28 = smov 8  }
 0x550   :  { %2235 = dma.vmem_to_hbm [thread:$0]  %s2230_s20, 512, %s3760_s4, [#allocation5], %s3202_s27, %s3202_s27, %s3203_s28  }
 0x551   :  { %3195 = dma.done.wait [#allocation5], 512  }
 0x552   :  { %3196 = vsyncadd [#allocation5], 4294966784 }
 0x553   :  { %2239 = vsyncpa [#allocation5], 1 }

</bundles_post_ra>
